<compile_context>
chip_gen: v6e
topology: v6e:2x2x1
jax: 0.10.0
libtpu: 0.0.40
codegen_flags: <defaults>
</compile_context>

<pallas_src>
import functools
import math

import jax
import jax.numpy as jnp
from jax.experimental import pallas as pl
from jax.experimental.pallas import tpu as pltpu


# ------------------------------------------------------------------- config --

VOCAB = 64
HIDDEN = 32
NUM_HEADS = 2
HEAD_DIM = HIDDEN // NUM_HEADS
INTERMEDIATE = 64
NUM_LAYERS = 2
MAX_POS = 16
LN_EPS = 1e-12

OUT_LANES = 128   # lane-dense output width (unmasked vst); sliced to VOCAB on host
SLAB_LANES = 128  # weight-slab lane width
SUBLANE = 8       # f32 sublane tile (row alignment inside the slab)


# ------------------------------------------------------------- fused kernel --

def _fused_forward_kernel(ids_ref, pos_type_ref, w_ref, out_ref, *,
                          B, S, layout, num_layers, num_heads, head_dim,
                          hidden, vocab, eps):
    """Whole BertLMHeadModel forward in one kernel body.

    ids_ref      : (M, 1)  int32   token ids
    pos_type_ref : (M, H)  f32     position + token-type embeddings (pre-tiled)
    w_ref        : (R, 128) f32    packed weight slab (static layout)
    out_ref      : (M, 128) f32    lane-dense logits (cols >= vocab are padding)
    """
    M = B * S
    H = hidden
    scale = 1.0 / math.sqrt(head_dim)

    def get(name):
        r0, rows, cols = layout[name]
        return w_ref[r0:r0 + rows, 0:cols]

    def ln(x, g, b):
        mean = jnp.mean(x, axis=-1, keepdims=True)
        var = jnp.mean(jnp.square(x - mean), axis=-1, keepdims=True)
        return (x - mean) * jax.lax.rsqrt(var + eps) * g + b

    def gelu(x):
        # TODO(synk): HF BERT default is exact (erf) GELU; tanh approximation
        #             used because erf is not guaranteed to lower in Mosaic.
        return jax.nn.gelu(x, approximate=True)

    # ---- embeddings: one-hot matmul gather (MXU) + (pos+type) add + LayerNorm
    ids = ids_ref[...]                                                  # (M, 1)
    onehot = (ids == jax.lax.broadcasted_iota(jnp.int32, (M, vocab), 1)
              ).astype(jnp.float32)                                     # (M, V)
    x = jnp.dot(onehot, get("word_emb"),
                preferred_element_type=jnp.float32) + pos_type_ref[...]  # (M, H)
    x = ln(x, get("emb_ln_g"), get("emb_ln_b"))

    # ---- transformer encoder layers (statically unrolled) --------------------
    for l in range(num_layers):
        pfx = f"l{l}_"

        # Fused QKV projection: (M, H) @ (H, 3H)
        qkv = jnp.dot(x, get(pfx + "qkv_w"),
                      preferred_element_type=jnp.float32) + get(pfx + "qkv_b")

        # Per-head attention, batched over B with 3-D dot_general.
        ctx_heads = []
        for h in range(num_heads):
            lo = h * head_dim
            qh = qkv[:, lo:lo + head_dim].reshape(B, S, head_dim)
            kh = qkv[:, H + lo:H + lo + head_dim].reshape(B, S, head_dim)
            vh = qkv[:, 2 * H + lo:2 * H + lo + head_dim].reshape(B, S, head_dim)

            s_ = jax.lax.dot_general(
                qh, kh, (((2,), (2,)), ((0,), (0,))),
                preferred_element_type=jnp.float32) * scale             # (B, S, S)
            s_ = s_ - jnp.max(s_, axis=-1, keepdims=True)
            p = jnp.exp(s_)
            p = p / jnp.sum(p, axis=-1, keepdims=True)                  # exact softmax
            ctx = jax.lax.dot_general(
                p, vh, (((2,), (1,)), ((0,), (0,))),
                preferred_element_type=jnp.float32)                     # (B, S, dH)
            ctx_heads.append(ctx.reshape(M, head_dim))
        ctx = jnp.concatenate(ctx_heads, axis=-1)                       # (M, H)

        attn_out = jnp.dot(ctx, get(pfx + "o_w"),
                           preferred_element_type=jnp.float32) + get(pfx + "o_b")
        x = ln(attn_out + x, get(pfx + "attn_ln_g"), get(pfx + "attn_ln_b"))

        inter = gelu(jnp.dot(x, get(pfx + "i_w"),
                             preferred_element_type=jnp.float32) + get(pfx + "i_b"))
        ffn_out = jnp.dot(inter, get(pfx + "out_w"),
                          preferred_element_type=jnp.float32) + get(pfx + "out_b")
        x = ln(ffn_out + x, get(pfx + "ffn_ln_g"), get(pfx + "ffn_ln_b"))

    # ---- BertLMPredictionHead: dense + gelu + LayerNorm + decoder ------------
    hact = gelu(jnp.dot(x, get("head_dense_w"),
                        preferred_element_type=jnp.float32) + get("head_dense_b"))
    hact = ln(hact, get("head_ln_g"), get("head_ln_b"))
    logits = jnp.dot(hact, get("decoder_w"),                            # (M, 128)
                     preferred_element_type=jnp.float32) + get("decoder_b")
    out_ref[...] = logits.astype(out_ref.dtype)                         # lane-dense store


# ------------------------------------------------------------------- params --

def init_params(key):
    def nrm(key, shape, std=0.02):
        return (std * jax.random.normal(key, shape)).astype(jnp.float32)

    keys = iter(jax.random.split(key, 16 + NUM_LAYERS * 16))
    p = {
        "word_emb": nrm(next(keys), (VOCAB, HIDDEN)),
        "pos_emb": nrm(next(keys), (MAX_POS, HIDDEN)),
        "type_emb": nrm(next(keys), (2, HIDDEN)),
        "emb_ln_g": jnp.ones((1, HIDDEN), jnp.float32),
        "emb_ln_b": jnp.zeros((1, HIDDEN), jnp.float32),
        "head_dense_w": nrm(next(keys), (HIDDEN, HIDDEN)),
        "head_dense_b": jnp.zeros((1, HIDDEN), jnp.float32),
        "head_ln_g": jnp.ones((1, HIDDEN), jnp.float32),
        "head_ln_b": jnp.zeros((1, HIDDEN), jnp.float32),
        # TODO(synk): HF BertLMPredictionHead usually ties decoder_w to word_emb;
        #             kept independent here to match the original translation.
        "decoder_w": nrm(next(keys), (HIDDEN, VOCAB)),
        "decoder_b": jnp.zeros((1, VOCAB), jnp.float32),
        "layers": [],
    }
    for _ in range(NUM_LAYERS):
        layer = {
            "q_w": nrm(next(keys), (HIDDEN, HIDDEN)),
            "q_b": jnp.zeros((1, HIDDEN), jnp.float32),
            "k_w": nrm(next(keys), (HIDDEN, HIDDEN)),
            "k_b": jnp.zeros((1, HIDDEN), jnp.float32),
            "v_w": nrm(next(keys), (HIDDEN, HIDDEN)),
            "v_b": jnp.zeros((1, HIDDEN), jnp.float32),
            "o_w": nrm(next(keys), (HIDDEN, HIDDEN)),
            "o_b": jnp.zeros((1, HIDDEN), jnp.float32),
            "attn_ln_g": jnp.ones((1, HIDDEN), jnp.float32),
            "attn_ln_b": jnp.zeros((1, HIDDEN), jnp.float32),
            "i_w": nrm(next(keys), (HIDDEN, INTERMEDIATE)),
            "i_b": jnp.zeros((1, INTERMEDIATE), jnp.float32),
            "out_w": nrm(next(keys), (INTERMEDIATE, HIDDEN)),
            "out_b": jnp.zeros((1, HIDDEN), jnp.float32),
            "ffn_ln_g": jnp.ones((1, HIDDEN), jnp.float32),
            "ffn_ln_b": jnp.zeros((1, HIDDEN), jnp.float32),
        }
        p["layers"].append(layer)
    return p


def build_packed_params(params):
    """Pack every weight/bias into ONE (rows, 128) f32 slab (8-row aligned blocks).

    Returns (slab, layout) where layout[name] = (row_offset, real_rows, real_cols)
    for static in-kernel slicing. QKV weights/biases are fused, decoder weights
    are zero-padded to 128 lanes so the kernel output is lane-dense.
    """
    entries = [
        ("word_emb", params["word_emb"]),
        ("emb_ln_g", params["emb_ln_g"]),
        ("emb_ln_b", params["emb_ln_b"]),
    ]
    for l, lp in enumerate(params["layers"]):
        pfx = f"l{l}_"
        qkv_w = jnp.concatenate([lp["q_w"], lp["k_w"], lp["v_w"]], axis=1)
        qkv_b = jnp.concatenate([lp["q_b"], lp["k_b"], lp["v_b"]], axis=1)
        entries += [
            (pfx + "qkv_w", qkv_w), (pfx + "qkv_b", qkv_b),
            (pfx + "o_w", lp["o_w"]), (pfx + "o_b", lp["o_b"]),
            (pfx + "attn_ln_g", lp["attn_ln_g"]), (pfx + "attn_ln_b", lp["attn_ln_b"]),
            (pfx + "i_w", lp["i_w"]), (pfx + "i_b", lp["i_b"]),
            (pfx + "out_w", lp["out_w"]), (pfx + "out_b", lp["out_b"]),
            (pfx + "ffn_ln_g", lp["ffn_ln_g"]), (pfx + "ffn_ln_b", lp["ffn_ln_b"]),
        ]
    entries += [
        ("head_dense_w", params["head_dense_w"]),
        ("head_dense_b", params["head_dense_b"]),
        ("head_ln_g", params["head_ln_g"]),
        ("head_ln_b", params["head_ln_b"]),
    ]
    dec_w = jnp.zeros((HIDDEN, OUT_LANES), jnp.float32).at[:, :VOCAB].set(
        params["decoder_w"])
    dec_b = jnp.zeros((1, OUT_LANES), jnp.float32).at[:, :VOCAB].set(
        params["decoder_b"])
    entries += [("decoder_w", dec_w), ("decoder_b", dec_b)]

    layout = {}
    blocks = []
    row = 0
    for name, arr in entries:
        arr = jnp.asarray(arr, jnp.float32)
        nr, nc = arr.shape
        layout[name] = (row, nr, nc)
        padded_rows = -(-nr // SUBLANE) * SUBLANE
        block = jnp.zeros((padded_rows, SLAB_LANES), jnp.float32)
        block = block.at[:nr, :nc].set(arr)
        blocks.append(block)
        row += padded_rows
    slab = jnp.concatenate(blocks, axis=0)
    return slab, layout


# ------------------------------------------------------------------ forward --

def quark_predictor_forward(weight_slab, pos_emb, type_emb, input_ids, *, layout):
    """Equivalent of QuarkPredictor.forward(input_ids) -> logits (B, S, vocab)."""
    B, S = input_ids.shape
    assert S <= MAX_POS, f"sequence length {S} exceeds MAX_POS={MAX_POS}"
    M = B * S

    # Position + token-type (=0) embedding, pre-tiled to (M, H) outside the kernel.
    pos_type = jnp.tile(pos_emb[:S, :] + type_emb[0:1, :], (B, 1)).astype(jnp.float32)
    ids2d = input_ids.reshape(M, 1).astype(jnp.int32)

    kernel = functools.partial(
        _fused_forward_kernel,
        B=B, S=S, layout=layout, num_layers=NUM_LAYERS, num_heads=NUM_HEADS,
        head_dim=HEAD_DIM, hidden=HIDDEN, vocab=VOCAB, eps=LN_EPS)

    # Single fused kernel, no grid (no pipeline prologue/epilogue, no
    # double-buffering): 3 operands, all fully VMEM-resident (<0.5 MB total).
    vmem_spec = pl.BlockSpec(memory_space=pltpu.MemorySpace.VMEM)
    logits_padded = pl.pallas_call(
        kernel,
        out_shape=jax.ShapeDtypeStruct((M, OUT_LANES), jnp.float32),
        in_specs=[vmem_spec, vmem_spec, vmem_spec],
        out_specs=vmem_spec,
    )(ids2d, pos_type, weight_slab)

    return logits_padded[:, :VOCAB].reshape(B, S, VOCAB)


class QuarkPredictor:
    """JAX/Pallas analogue of the PyTorch QuarkPredictor wrapper."""

    def __init__(self, params, quantile_token: int):
        self.quantile_token = quantile_token
        self.weight_slab, self.layout = build_packed_params(params)
        self.pos_emb = jnp.asarray(params["pos_emb"], jnp.float32)
        self.type_emb = jnp.asarray(params["type_emb"], jnp.float32)
        self._forward = jax.jit(
            functools.partial(quark_predictor_forward, layout=self.layout))

    def __call__(self, input_ids):
        return self._forward(self.weight_slab, self.pos_emb, self.type_emb,
                             input_ids)

    # TODO(synk): `generate` relies on HF's autoregressive decoding loop
    #             (beam search / sampling machinery); not reproduced here.


# -------------------------------------------------------------------- main ---

if __name__ == "__main__":
    key = jax.random.PRNGKey(0)
    params = init_params(jax.random.PRNGKey(42))
    predictor = QuarkPredictor(params, quantile_token=VOCAB - 1)

    B, S = 2, 8
    input_ids = jax.random.randint(key, (B, S), 0, VOCAB, dtype=jnp.int32)

    logits = predictor(input_ids)
    logits = jax.block_until_ready(logits)
    assert logits.shape == (B, S, VOCAB)
    assert logits.dtype == jnp.float32
    assert bool(jnp.all(jnp.isfinite(logits)))
    print("KERNEL_OK")
</pallas_src>

<mosaic_0001>
module attributes {stable_mosaic.version = 11 : i64} {
  func.func @_fused_forward_kernel(%arg0: memref<16x1xi32, #tpu.memory_space<vmem>>, %arg1: memref<16x32xf32, #tpu.memory_space<vmem>>, %arg2: memref<624x128xf32, #tpu.memory_space<vmem>>, %arg3: memref<16x128xf32, #tpu.memory_space<vmem>>) attributes {dimension_semantics = [], scalar_prefetch = 0 : i64, scratch_operands = 0 : i64, tpu.core_type = #tpu.core_type<tc>} {
    %c0 = arith.constant 0 : index
    %c0_0 = arith.constant 0 : index
    %0 = vector.load %arg0[%c0, %c0_0] : memref<16x1xi32, #tpu.memory_space<vmem>>, vector<16x1xi32>
    %1 = tpu.iota {dimensions = array<i32: 1>} : vector<16x64xi32>
    %2 = vector.broadcast %0 : vector<16x1xi32> to vector<16x64xi32>
    %3 = arith.cmpi eq, %2, %1 : vector<16x64xi32>
    %4 = arith.extui %3 : vector<16x64xi1> to vector<16x64xi32>
    %5 = arith.sitofp %4 : vector<16x64xi32> to vector<16x64xf32>
    %c0_1 = arith.constant 0 : index
    %c0_2 = arith.constant 0 : index
    %6 = vector.load %arg2[%c0_1, %c0_2] : memref<624x128xf32, #tpu.memory_space<vmem>>, vector<64x32xf32>
    %cst = arith.constant dense<0.000000e+00> : vector<16x32xf32>
    %7 = tpu.matmul %5, %6, %cst {dimension_numbers = #tpu.dot_dimension_numbers<[1], [0], [0], [1], [0, 0, 1, 1], [], []>} : vector<16x64xf32>, vector<64x32xf32>, vector<16x32xf32> -> vector<16x32xf32>
    %c0_3 = arith.constant 0 : index
    %c0_4 = arith.constant 0 : index
    %8 = vector.load %arg1[%c0_3, %c0_4] : memref<16x32xf32, #tpu.memory_space<vmem>>, vector<16x32xf32>
    %9 = arith.addf %7, %8 : vector<16x32xf32>
    %c64 = arith.constant 64 : index
    %c0_5 = arith.constant 0 : index
    %10 = vector.load %arg2[%c64, %c0_5] : memref<624x128xf32, #tpu.memory_space<vmem>>, vector<1x32xf32>
    %c72 = arith.constant 72 : index
    %c0_6 = arith.constant 0 : index
    %11 = vector.load %arg2[%c72, %c0_6] : memref<624x128xf32, #tpu.memory_space<vmem>>, vector<1x32xf32>
    %cst_7 = arith.constant dense<0.000000e+00> : vector<16xf32>
    %12 = vector.multi_reduction <add>, %9, %cst_7 [1] : vector<16x32xf32> to vector<16xf32>
    %13 = vector.shape_cast %12 : vector<16xf32> to vector<16x1xf32>
    %cst_8 = arith.constant 3.200000e+01 : f32
    %14 = vector.broadcast %cst_8 : f32 to vector<16x1xf32>
    %15 = arith.divf %13, %14 : vector<16x1xf32>
    %16 = vector.broadcast %15 : vector<16x1xf32> to vector<16x32xf32>
    %17 = arith.subf %9, %16 : vector<16x32xf32>
    %18 = arith.mulf %17, %17 : vector<16x32xf32>
    %cst_9 = arith.constant dense<0.000000e+00> : vector<16xf32>
    %19 = vector.multi_reduction <add>, %18, %cst_9 [1] : vector<16x32xf32> to vector<16xf32>
    %20 = vector.shape_cast %19 : vector<16xf32> to vector<16x1xf32>
    %cst_10 = arith.constant 3.200000e+01 : f32
    %21 = vector.broadcast %cst_10 : f32 to vector<16x1xf32>
    %22 = arith.divf %20, %21 : vector<16x1xf32>
    %23 = vector.broadcast %15 : vector<16x1xf32> to vector<16x32xf32>
    %24 = arith.subf %9, %23 : vector<16x32xf32>
    %cst_11 = arith.constant 9.99999996E-13 : f32
    %25 = vector.broadcast %cst_11 : f32 to vector<16x1xf32>
    %26 = arith.addf %22, %25 : vector<16x1xf32>
    %27 = math.rsqrt %26 : vector<16x1xf32>
    %28 = vector.broadcast %27 : vector<16x1xf32> to vector<16x32xf32>
    %29 = arith.mulf %24, %28 : vector<16x32xf32>
    %30 = vector.broadcast %10 : vector<1x32xf32> to vector<16x32xf32>
    %31 = arith.mulf %29, %30 : vector<16x32xf32>
    %32 = vector.broadcast %11 : vector<1x32xf32> to vector<16x32xf32>
    %33 = arith.addf %31, %32 : vector<16x32xf32>
    %c80 = arith.constant 80 : index
    %c0_12 = arith.constant 0 : index
    %34 = vector.load %arg2[%c80, %c0_12] : memref<624x128xf32, #tpu.memory_space<vmem>>, vector<32x96xf32>
    %cst_13 = arith.constant dense<0.000000e+00> : vector<16x96xf32>
    %35 = tpu.matmul %33, %34, %cst_13 {dimension_numbers = #tpu.dot_dimension_numbers<[1], [0], [0], [1], [0, 0, 1, 1], [], []>} : vector<16x32xf32>, vector<32x96xf32>, vector<16x96xf32> -> vector<16x96xf32>
    %c112 = arith.constant 112 : index
    %c0_14 = arith.constant 0 : index
    %36 = vector.load %arg2[%c112, %c0_14] : memref<624x128xf32, #tpu.memory_space<vmem>>, vector<1x96xf32>
    %37 = vector.broadcast %36 : vector<1x96xf32> to vector<16x96xf32>
    %38 = arith.addf %35, %37 : vector<16x96xf32>
    %39 = vector.extract_strided_slice %38 {offsets = [0, 0], sizes = [16, 16], strides = [1, 1]} : vector<16x96xf32> to vector<16x16xf32>
    %40 = vector.shape_cast %39 : vector<16x16xf32> to vector<2x8x16xf32>
    %41 = vector.extract_strided_slice %38 {offsets = [0, 32], sizes = [16, 16], strides = [1, 1]} : vector<16x96xf32> to vector<16x16xf32>
    %42 = vector.shape_cast %41 : vector<16x16xf32> to vector<2x8x16xf32>
    %43 = vector.extract_strided_slice %38 {offsets = [0, 64], sizes = [16, 16], strides = [1, 1]} : vector<16x96xf32> to vector<16x16xf32>
    %44 = vector.shape_cast %43 : vector<16x16xf32> to vector<2x8x16xf32>
    %cst_15 = arith.constant dense<0.000000e+00> : vector<2x8x8xf32>
    %45 = tpu.matmul %40, %42, %cst_15 {dimension_numbers = #tpu.dot_dimension_numbers<[2], [2], [1], [1], [0, 0, 0, 1, 1, 1], [0], [0]>} : vector<2x8x16xf32>, vector<2x8x16xf32>, vector<2x8x8xf32> -> vector<2x8x8xf32>
    %cst_16 = arith.constant 2.500000e-01 : f32
    %46 = vector.broadcast %cst_16 : f32 to vector<2x8x8xf32>
    %47 = arith.mulf %45, %46 : vector<2x8x8xf32>
    %cst_17 = arith.constant dense<0xFF800000> : vector<2x8xf32>
    %48 = vector.multi_reduction <maximumf>, %47, %cst_17 [2] : vector<2x8x8xf32> to vector<2x8xf32>
    %49 = vector.shape_cast %48 : vector<2x8xf32> to vector<2x8x1xf32>
    %50 = vector.broadcast %49 : vector<2x8x1xf32> to vector<2x8x8xf32>
    %51 = arith.subf %47, %50 : vector<2x8x8xf32>
    %52 = math.exp %51 : vector<2x8x8xf32>
    %cst_18 = arith.constant dense<0.000000e+00> : vector<2x8xf32>
    %53 = vector.multi_reduction <add>, %52, %cst_18 [2] : vector<2x8x8xf32> to vector<2x8xf32>
    %54 = vector.shape_cast %53 : vector<2x8xf32> to vector<2x8x1xf32>
    %55 = vector.broadcast %54 : vector<2x8x1xf32> to vector<2x8x8xf32>
    %56 = arith.divf %52, %55 : vector<2x8x8xf32>
    %cst_19 = arith.constant dense<0.000000e+00> : vector<2x8x16xf32>
    %57 = tpu.matmul %56, %44, %cst_19 {dimension_numbers = #tpu.dot_dimension_numbers<[2], [1], [1], [2], [0, 0, 0, 1, 1, 2], [0], [0]>} : vector<2x8x8xf32>, vector<2x8x16xf32>, vector<2x8x16xf32> -> vector<2x8x16xf32>
    %58 = vector.shape_cast %57 : vector<2x8x16xf32> to vector<16x16xf32>
    %59 = vector.extract_strided_slice %38 {offsets = [0, 16], sizes = [16, 16], strides = [1, 1]} : vector<16x96xf32> to vector<16x16xf32>
    %60 = vector.shape_cast %59 : vector<16x16xf32> to vector<2x8x16xf32>
    %61 = vector.extract_strided_slice %38 {offsets = [0, 48], sizes = [16, 16], strides = [1, 1]} : vector<16x96xf32> to vector<16x16xf32>
    %62 = vector.shape_cast %61 : vector<16x16xf32> to vector<2x8x16xf32>
    %63 = vector.extract_strided_slice %38 {offsets = [0, 80], sizes = [16, 16], strides = [1, 1]} : vector<16x96xf32> to vector<16x16xf32>
    %64 = vector.shape_cast %63 : vector<16x16xf32> to vector<2x8x16xf32>
    %cst_20 = arith.constant dense<0.000000e+00> : vector<2x8x8xf32>
    %65 = tpu.matmul %60, %62, %cst_20 {dimension_numbers = #tpu.dot_dimension_numbers<[2], [2], [1], [1], [0, 0, 0, 1, 1, 1], [0], [0]>} : vector<2x8x16xf32>, vector<2x8x16xf32>, vector<2x8x8xf32> -> vector<2x8x8xf32>
    %cst_21 = arith.constant 2.500000e-01 : f32
    %66 = vector.broadcast %cst_21 : f32 to vector<2x8x8xf32>
    %67 = arith.mulf %65, %66 : vector<2x8x8xf32>
    %cst_22 = arith.constant dense<0xFF800000> : vector<2x8xf32>
    %68 = vector.multi_reduction <maximumf>, %67, %cst_22 [2] : vector<2x8x8xf32> to vector<2x8xf32>
    %69 = vector.shape_cast %68 : vector<2x8xf32> to vector<2x8x1xf32>
    %70 = vector.broadcast %69 : vector<2x8x1xf32> to vector<2x8x8xf32>
    %71 = arith.subf %67, %70 : vector<2x8x8xf32>
    %72 = math.exp %71 : vector<2x8x8xf32>
    %cst_23 = arith.constant dense<0.000000e+00> : vector<2x8xf32>
    %73 = vector.multi_reduction <add>, %72, %cst_23 [2] : vector<2x8x8xf32> to vector<2x8xf32>
    %74 = vector.shape_cast %73 : vector<2x8xf32> to vector<2x8x1xf32>
    %75 = vector.broadcast %74 : vector<2x8x1xf32> to vector<2x8x8xf32>
    %76 = arith.divf %72, %75 : vector<2x8x8xf32>
    %cst_24 = arith.constant dense<0.000000e+00> : vector<2x8x16xf32>
    %77 = tpu.matmul %76, %64, %cst_24 {dimension_numbers = #tpu.dot_dimension_numbers<[2], [1], [1], [2], [0, 0, 0, 1, 1, 2], [0], [0]>} : vector<2x8x8xf32>, vector<2x8x16xf32>, vector<2x8x16xf32> -> vector<2x8x16xf32>
    %78 = vector.shape_cast %77 : vector<2x8x16xf32> to vector<16x16xf32>
    %79 = tpu.concatenate %58, %78 in 1 : vector<16x16xf32>, vector<16x16xf32> -> vector<16x32xf32>
    %c120 = arith.constant 120 : index
    %c0_25 = arith.constant 0 : index
    %80 = vector.load %arg2[%c120, %c0_25] : memref<624x128xf32, #tpu.memory_space<vmem>>, vector<32x32xf32>
    %cst_26 = arith.constant dense<0.000000e+00> : vector<16x32xf32>
    %81 = tpu.matmul %79, %80, %cst_26 {dimension_numbers = #tpu.dot_dimension_numbers<[1], [0], [0], [1], [0, 0, 1, 1], [], []>} : vector<16x32xf32>, vector<32x32xf32>, vector<16x32xf32> -> vector<16x32xf32>
    %c152 = arith.constant 152 : index
    %c0_27 = arith.constant 0 : index
    %82 = vector.load %arg2[%c152, %c0_27] : memref<624x128xf32, #tpu.memory_space<vmem>>, vector<1x32xf32>
    %83 = vector.broadcast %82 : vector<1x32xf32> to vector<16x32xf32>
    %84 = arith.addf %81, %83 : vector<16x32xf32>
    %85 = arith.addf %84, %33 : vector<16x32xf32>
    %c160 = arith.constant 160 : index
    %c0_28 = arith.constant 0 : index
    %86 = vector.load %arg2[%c160, %c0_28] : memref<624x128xf32, #tpu.memory_space<vmem>>, vector<1x32xf32>
    %c168 = arith.constant 168 : index
    %c0_29 = arith.constant 0 : index
    %87 = vector.load %arg2[%c168, %c0_29] : memref<624x128xf32, #tpu.memory_space<vmem>>, vector<1x32xf32>
    %cst_30 = arith.constant dense<0.000000e+00> : vector<16xf32>
    %88 = vector.multi_reduction <add>, %85, %cst_30 [1] : vector<16x32xf32> to vector<16xf32>
    %89 = vector.shape_cast %88 : vector<16xf32> to vector<16x1xf32>
    %cst_31 = arith.constant 3.200000e+01 : f32
    %90 = vector.broadcast %cst_31 : f32 to vector<16x1xf32>
    %91 = arith.divf %89, %90 : vector<16x1xf32>
    %92 = vector.broadcast %91 : vector<16x1xf32> to vector<16x32xf32>
    %93 = arith.subf %85, %92 : vector<16x32xf32>
    %94 = arith.mulf %93, %93 : vector<16x32xf32>
    %cst_32 = arith.constant dense<0.000000e+00> : vector<16xf32>
    %95 = vector.multi_reduction <add>, %94, %cst_32 [1] : vector<16x32xf32> to vector<16xf32>
    %96 = vector.shape_cast %95 : vector<16xf32> to vector<16x1xf32>
    %cst_33 = arith.constant 3.200000e+01 : f32
    %97 = vector.broadcast %cst_33 : f32 to vector<16x1xf32>
    %98 = arith.divf %96, %97 : vector<16x1xf32>
    %99 = vector.broadcast %91 : vector<16x1xf32> to vector<16x32xf32>
    %100 = arith.subf %85, %99 : vector<16x32xf32>
    %cst_34 = arith.constant 9.99999996E-13 : f32
    %101 = vector.broadcast %cst_34 : f32 to vector<16x1xf32>
    %102 = arith.addf %98, %101 : vector<16x1xf32>
    %103 = math.rsqrt %102 : vector<16x1xf32>
    %104 = vector.broadcast %103 : vector<16x1xf32> to vector<16x32xf32>
    %105 = arith.mulf %100, %104 : vector<16x32xf32>
    %106 = vector.broadcast %86 : vector<1x32xf32> to vector<16x32xf32>
    %107 = arith.mulf %105, %106 : vector<16x32xf32>
    %108 = vector.broadcast %87 : vector<1x32xf32> to vector<16x32xf32>
    %109 = arith.addf %107, %108 : vector<16x32xf32>
    %c176 = arith.constant 176 : index
    %c0_35 = arith.constant 0 : index
    %110 = vector.load %arg2[%c176, %c0_35] : memref<624x128xf32, #tpu.memory_space<vmem>>, vector<32x64xf32>
    %cst_36 = arith.constant dense<0.000000e+00> : vector<16x64xf32>
    %111 = tpu.matmul %109, %110, %cst_36 {dimension_numbers = #tpu.dot_dimension_numbers<[1], [0], [0], [1], [0, 0, 1, 1], [], []>} : vector<16x32xf32>, vector<32x64xf32>, vector<16x64xf32> -> vector<16x64xf32>
    %c208 = arith.constant 208 : index
    %c0_37 = arith.constant 0 : index
    %112 = vector.load %arg2[%c208, %c0_37] : memref<624x128xf32, #tpu.memory_space<vmem>>, vector<1x64xf32>
    %113 = vector.broadcast %112 : vector<1x64xf32> to vector<16x64xf32>
    %114 = arith.addf %111, %113 : vector<16x64xf32>
    %115 = arith.mulf %114, %114 : vector<16x64xf32>
    %116 = arith.mulf %114, %115 : vector<16x64xf32>
    %cst_38 = arith.constant 4.471500e-02 : f32
    %117 = vector.broadcast %cst_38 : f32 to vector<16x64xf32>
    %118 = arith.mulf %117, %116 : vector<16x64xf32>
    %119 = arith.addf %114, %118 : vector<16x64xf32>
    %cst_39 = arith.constant 0.797884583 : f32
    %120 = vector.broadcast %cst_39 : f32 to vector<16x64xf32>
    %121 = arith.mulf %120, %119 : vector<16x64xf32>
    %122 = math.tanh %121 : vector<16x64xf32>
    %cst_40 = arith.constant 1.000000e+00 : f32
    %123 = vector.broadcast %cst_40 : f32 to vector<16x64xf32>
    %124 = arith.addf %123, %122 : vector<16x64xf32>
    %cst_41 = arith.constant 5.000000e-01 : f32
    %125 = vector.broadcast %cst_41 : f32 to vector<16x64xf32>
    %126 = arith.mulf %125, %124 : vector<16x64xf32>
    %127 = arith.mulf %114, %126 : vector<16x64xf32>
    %c216 = arith.constant 216 : index
    %c0_42 = arith.constant 0 : index
    %128 = vector.load %arg2[%c216, %c0_42] : memref<624x128xf32, #tpu.memory_space<vmem>>, vector<64x32xf32>
    %cst_43 = arith.constant dense<0.000000e+00> : vector<16x32xf32>
    %129 = tpu.matmul %127, %128, %cst_43 {dimension_numbers = #tpu.dot_dimension_numbers<[1], [0], [0], [1], [0, 0, 1, 1], [], []>} : vector<16x64xf32>, vector<64x32xf32>, vector<16x32xf32> -> vector<16x32xf32>
    %c280 = arith.constant 280 : index
    %c0_44 = arith.constant 0 : index
    %130 = vector.load %arg2[%c280, %c0_44] : memref<624x128xf32, #tpu.memory_space<vmem>>, vector<1x32xf32>
    %131 = vector.broadcast %130 : vector<1x32xf32> to vector<16x32xf32>
    %132 = arith.addf %129, %131 : vector<16x32xf32>
    %133 = arith.addf %132, %109 : vector<16x32xf32>
    %c288 = arith.constant 288 : index
    %c0_45 = arith.constant 0 : index
    %134 = vector.load %arg2[%c288, %c0_45] : memref<624x128xf32, #tpu.memory_space<vmem>>, vector<1x32xf32>
    %c296 = arith.constant 296 : index
    %c0_46 = arith.constant 0 : index
    %135 = vector.load %arg2[%c296, %c0_46] : memref<624x128xf32, #tpu.memory_space<vmem>>, vector<1x32xf32>
    %cst_47 = arith.constant dense<0.000000e+00> : vector<16xf32>
    %136 = vector.multi_reduction <add>, %133, %cst_47 [1] : vector<16x32xf32> to vector<16xf32>
    %137 = vector.shape_cast %136 : vector<16xf32> to vector<16x1xf32>
    %cst_48 = arith.constant 3.200000e+01 : f32
    %138 = vector.broadcast %cst_48 : f32 to vector<16x1xf32>
    %139 = arith.divf %137, %138 : vector<16x1xf32>
    %140 = vector.broadcast %139 : vector<16x1xf32> to vector<16x32xf32>
    %141 = arith.subf %133, %140 : vector<16x32xf32>
    %142 = arith.mulf %141, %141 : vector<16x32xf32>
    %cst_49 = arith.constant dense<0.000000e+00> : vector<16xf32>
    %143 = vector.multi_reduction <add>, %142, %cst_49 [1] : vector<16x32xf32> to vector<16xf32>
    %144 = vector.shape_cast %143 : vector<16xf32> to vector<16x1xf32>
    %cst_50 = arith.constant 3.200000e+01 : f32
    %145 = vector.broadcast %cst_50 : f32 to vector<16x1xf32>
    %146 = arith.divf %144, %145 : vector<16x1xf32>
    %147 = vector.broadcast %139 : vector<16x1xf32> to vector<16x32xf32>
    %148 = arith.subf %133, %147 : vector<16x32xf32>
    %cst_51 = arith.constant 9.99999996E-13 : f32
    %149 = vector.broadcast %cst_51 : f32 to vector<16x1xf32>
    %150 = arith.addf %146, %149 : vector<16x1xf32>
    %151 = math.rsqrt %150 : vector<16x1xf32>
    %152 = vector.broadcast %151 : vector<16x1xf32> to vector<16x32xf32>
    %153 = arith.mulf %148, %152 : vector<16x32xf32>
    %154 = vector.broadcast %134 : vector<1x32xf32> to vector<16x32xf32>
    %155 = arith.mulf %153, %154 : vector<16x32xf32>
    %156 = vector.broadcast %135 : vector<1x32xf32> to vector<16x32xf32>
    %157 = arith.addf %155, %156 : vector<16x32xf32>
    %c304 = arith.constant 304 : index
    %c0_52 = arith.constant 0 : index
    %158 = vector.load %arg2[%c304, %c0_52] : memref<624x128xf32, #tpu.memory_space<vmem>>, vector<32x96xf32>
    %cst_53 = arith.constant dense<0.000000e+00> : vector<16x96xf32>
    %159 = tpu.matmul %157, %158, %cst_53 {dimension_numbers = #tpu.dot_dimension_numbers<[1], [0], [0], [1], [0, 0, 1, 1], [], []>} : vector<16x32xf32>, vector<32x96xf32>, vector<16x96xf32> -> vector<16x96xf32>
    %c336 = arith.constant 336 : index
    %c0_54 = arith.constant 0 : index
    %160 = vector.load %arg2[%c336, %c0_54] : memref<624x128xf32, #tpu.memory_space<vmem>>, vector<1x96xf32>
    %161 = vector.broadcast %160 : vector<1x96xf32> to vector<16x96xf32>
    %162 = arith.addf %159, %161 : vector<16x96xf32>
    %163 = vector.extract_strided_slice %162 {offsets = [0, 0], sizes = [16, 16], strides = [1, 1]} : vector<16x96xf32> to vector<16x16xf32>
    %164 = vector.shape_cast %163 : vector<16x16xf32> to vector<2x8x16xf32>
    %165 = vector.extract_strided_slice %162 {offsets = [0, 32], sizes = [16, 16], strides = [1, 1]} : vector<16x96xf32> to vector<16x16xf32>
    %166 = vector.shape_cast %165 : vector<16x16xf32> to vector<2x8x16xf32>
    %167 = vector.extract_strided_slice %162 {offsets = [0, 64], sizes = [16, 16], strides = [1, 1]} : vector<16x96xf32> to vector<16x16xf32>
    %168 = vector.shape_cast %167 : vector<16x16xf32> to vector<2x8x16xf32>
    %cst_55 = arith.constant dense<0.000000e+00> : vector<2x8x8xf32>
    %169 = tpu.matmul %164, %166, %cst_55 {dimension_numbers = #tpu.dot_dimension_numbers<[2], [2], [1], [1], [0, 0, 0, 1, 1, 1], [0], [0]>} : vector<2x8x16xf32>, vector<2x8x16xf32>, vector<2x8x8xf32> -> vector<2x8x8xf32>
    %cst_56 = arith.constant 2.500000e-01 : f32
    %170 = vector.broadcast %cst_56 : f32 to vector<2x8x8xf32>
    %171 = arith.mulf %169, %170 : vector<2x8x8xf32>
    %cst_57 = arith.constant dense<0xFF800000> : vector<2x8xf32>
    %172 = vector.multi_reduction <maximumf>, %171, %cst_57 [2] : vector<2x8x8xf32> to vector<2x8xf32>
    %173 = vector.shape_cast %172 : vector<2x8xf32> to vector<2x8x1xf32>
    %174 = vector.broadcast %173 : vector<2x8x1xf32> to vector<2x8x8xf32>
    %175 = arith.subf %171, %174 : vector<2x8x8xf32>
    %176 = math.exp %175 : vector<2x8x8xf32>
    %cst_58 = arith.constant dense<0.000000e+00> : vector<2x8xf32>
    %177 = vector.multi_reduction <add>, %176, %cst_58 [2] : vector<2x8x8xf32> to vector<2x8xf32>
    %178 = vector.shape_cast %177 : vector<2x8xf32> to vector<2x8x1xf32>
    %179 = vector.broadcast %178 : vector<2x8x1xf32> to vector<2x8x8xf32>
    %180 = arith.divf %176, %179 : vector<2x8x8xf32>
    %cst_59 = arith.constant dense<0.000000e+00> : vector<2x8x16xf32>
    %181 = tpu.matmul %180, %168, %cst_59 {dimension_numbers = #tpu.dot_dimension_numbers<[2], [1], [1], [2], [0, 0, 0, 1, 1, 2], [0], [0]>} : vector<2x8x8xf32>, vector<2x8x16xf32>, vector<2x8x16xf32> -> vector<2x8x16xf32>
    %182 = vector.shape_cast %181 : vector<2x8x16xf32> to vector<16x16xf32>
    %183 = vector.extract_strided_slice %162 {offsets = [0, 16], sizes = [16, 16], strides = [1, 1]} : vector<16x96xf32> to vector<16x16xf32>
    %184 = vector.shape_cast %183 : vector<16x16xf32> to vector<2x8x16xf32>
    %185 = vector.extract_strided_slice %162 {offsets = [0, 48], sizes = [16, 16], strides = [1, 1]} : vector<16x96xf32> to vector<16x16xf32>
    %186 = vector.shape_cast %185 : vector<16x16xf32> to vector<2x8x16xf32>
    %187 = vector.extract_strided_slice %162 {offsets = [0, 80], sizes = [16, 16], strides = [1, 1]} : vector<16x96xf32> to vector<16x16xf32>
    %188 = vector.shape_cast %187 : vector<16x16xf32> to vector<2x8x16xf32>
    %cst_60 = arith.constant dense<0.000000e+00> : vector<2x8x8xf32>
    %189 = tpu.matmul %184, %186, %cst_60 {dimension_numbers = #tpu.dot_dimension_numbers<[2], [2], [1], [1], [0, 0, 0, 1, 1, 1], [0], [0]>} : vector<2x8x16xf32>, vector<2x8x16xf32>, vector<2x8x8xf32> -> vector<2x8x8xf32>
    %cst_61 = arith.constant 2.500000e-01 : f32
    %190 = vector.broadcast %cst_61 : f32 to vector<2x8x8xf32>
    %191 = arith.mulf %189, %190 : vector<2x8x8xf32>
    %cst_62 = arith.constant dense<0xFF800000> : vector<2x8xf32>
    %192 = vector.multi_reduction <maximumf>, %191, %cst_62 [2] : vector<2x8x8xf32> to vector<2x8xf32>
    %193 = vector.shape_cast %192 : vector<2x8xf32> to vector<2x8x1xf32>
    %194 = vector.broadcast %193 : vector<2x8x1xf32> to vector<2x8x8xf32>
    %195 = arith.subf %191, %194 : vector<2x8x8xf32>
    %196 = math.exp %195 : vector<2x8x8xf32>
    %cst_63 = arith.constant dense<0.000000e+00> : vector<2x8xf32>
    %197 = vector.multi_reduction <add>, %196, %cst_63 [2] : vector<2x8x8xf32> to vector<2x8xf32>
    %198 = vector.shape_cast %197 : vector<2x8xf32> to vector<2x8x1xf32>
    %199 = vector.broadcast %198 : vector<2x8x1xf32> to vector<2x8x8xf32>
    %200 = arith.divf %196, %199 : vector<2x8x8xf32>
    %cst_64 = arith.constant dense<0.000000e+00> : vector<2x8x16xf32>
    %201 = tpu.matmul %200, %188, %cst_64 {dimension_numbers = #tpu.dot_dimension_numbers<[2], [1], [1], [2], [0, 0, 0, 1, 1, 2], [0], [0]>} : vector<2x8x8xf32>, vector<2x8x16xf32>, vector<2x8x16xf32> -> vector<2x8x16xf32>
    %202 = vector.shape_cast %201 : vector<2x8x16xf32> to vector<16x16xf32>
    %203 = tpu.concatenate %182, %202 in 1 : vector<16x16xf32>, vector<16x16xf32> -> vector<16x32xf32>
    %c344 = arith.constant 344 : index
    %c0_65 = arith.constant 0 : index
    %204 = vector.load %arg2[%c344, %c0_65] : memref<624x128xf32, #tpu.memory_space<vmem>>, vector<32x32xf32>
    %cst_66 = arith.constant dense<0.000000e+00> : vector<16x32xf32>
    %205 = tpu.matmul %203, %204, %cst_66 {dimension_numbers = #tpu.dot_dimension_numbers<[1], [0], [0], [1], [0, 0, 1, 1], [], []>} : vector<16x32xf32>, vector<32x32xf32>, vector<16x32xf32> -> vector<16x32xf32>
    %c376 = arith.constant 376 : index
    %c0_67 = arith.constant 0 : index
    %206 = vector.load %arg2[%c376, %c0_67] : memref<624x128xf32, #tpu.memory_space<vmem>>, vector<1x32xf32>
    %207 = vector.broadcast %206 : vector<1x32xf32> to vector<16x32xf32>
    %208 = arith.addf %205, %207 : vector<16x32xf32>
    %209 = arith.addf %208, %157 : vector<16x32xf32>
    %c384 = arith.constant 384 : index
    %c0_68 = arith.constant 0 : index
    %210 = vector.load %arg2[%c384, %c0_68] : memref<624x128xf32, #tpu.memory_space<vmem>>, vector<1x32xf32>
    %c392 = arith.constant 392 : index
    %c0_69 = arith.constant 0 : index
    %211 = vector.load %arg2[%c392, %c0_69] : memref<624x128xf32, #tpu.memory_space<vmem>>, vector<1x32xf32>
    %cst_70 = arith.constant dense<0.000000e+00> : vector<16xf32>
    %212 = vector.multi_reduction <add>, %209, %cst_70 [1] : vector<16x32xf32> to vector<16xf32>
    %213 = vector.shape_cast %212 : vector<16xf32> to vector<16x1xf32>
    %cst_71 = arith.constant 3.200000e+01 : f32
    %214 = vector.broadcast %cst_71 : f32 to vector<16x1xf32>
    %215 = arith.divf %213, %214 : vector<16x1xf32>
    %216 = vector.broadcast %215 : vector<16x1xf32> to vector<16x32xf32>
    %217 = arith.subf %209, %216 : vector<16x32xf32>
    %218 = arith.mulf %217, %217 : vector<16x32xf32>
    %cst_72 = arith.constant dense<0.000000e+00> : vector<16xf32>
    %219 = vector.multi_reduction <add>, %218, %cst_72 [1] : vector<16x32xf32> to vector<16xf32>
    %220 = vector.shape_cast %219 : vector<16xf32> to vector<16x1xf32>
    %cst_73 = arith.constant 3.200000e+01 : f32
    %221 = vector.broadcast %cst_73 : f32 to vector<16x1xf32>
    %222 = arith.divf %220, %221 : vector<16x1xf32>
    %223 = vector.broadcast %215 : vector<16x1xf32> to vector<16x32xf32>
    %224 = arith.subf %209, %223 : vector<16x32xf32>
    %cst_74 = arith.constant 9.99999996E-13 : f32
    %225 = vector.broadcast %cst_74 : f32 to vector<16x1xf32>
    %226 = arith.addf %222, %225 : vector<16x1xf32>
    %227 = math.rsqrt %226 : vector<16x1xf32>
    %228 = vector.broadcast %227 : vector<16x1xf32> to vector<16x32xf32>
    %229 = arith.mulf %224, %228 : vector<16x32xf32>
    %230 = vector.broadcast %210 : vector<1x32xf32> to vector<16x32xf32>
    %231 = arith.mulf %229, %230 : vector<16x32xf32>
    %232 = vector.broadcast %211 : vector<1x32xf32> to vector<16x32xf32>
    %233 = arith.addf %231, %232 : vector<16x32xf32>
    %c400 = arith.constant 400 : index
    %c0_75 = arith.constant 0 : index
    %234 = vector.load %arg2[%c400, %c0_75] : memref<624x128xf32, #tpu.memory_space<vmem>>, vector<32x64xf32>
    %cst_76 = arith.constant dense<0.000000e+00> : vector<16x64xf32>
    %235 = tpu.matmul %233, %234, %cst_76 {dimension_numbers = #tpu.dot_dimension_numbers<[1], [0], [0], [1], [0, 0, 1, 1], [], []>} : vector<16x32xf32>, vector<32x64xf32>, vector<16x64xf32> -> vector<16x64xf32>
    %c432 = arith.constant 432 : index
    %c0_77 = arith.constant 0 : index
    %236 = vector.load %arg2[%c432, %c0_77] : memref<624x128xf32, #tpu.memory_space<vmem>>, vector<1x64xf32>
    %237 = vector.broadcast %236 : vector<1x64xf32> to vector<16x64xf32>
    %238 = arith.addf %235, %237 : vector<16x64xf32>
    %239 = arith.mulf %238, %238 : vector<16x64xf32>
    %240 = arith.mulf %238, %239 : vector<16x64xf32>
    %cst_78 = arith.constant 4.471500e-02 : f32
    %241 = vector.broadcast %cst_78 : f32 to vector<16x64xf32>
    %242 = arith.mulf %241, %240 : vector<16x64xf32>
    %243 = arith.addf %238, %242 : vector<16x64xf32>
    %cst_79 = arith.constant 0.797884583 : f32
    %244 = vector.broadcast %cst_79 : f32 to vector<16x64xf32>
    %245 = arith.mulf %244, %243 : vector<16x64xf32>
    %246 = math.tanh %245 : vector<16x64xf32>
    %cst_80 = arith.constant 1.000000e+00 : f32
    %247 = vector.broadcast %cst_80 : f32 to vector<16x64xf32>
    %248 = arith.addf %247, %246 : vector<16x64xf32>
    %cst_81 = arith.constant 5.000000e-01 : f32
    %249 = vector.broadcast %cst_81 : f32 to vector<16x64xf32>
    %250 = arith.mulf %249, %248 : vector<16x64xf32>
    %251 = arith.mulf %238, %250 : vector<16x64xf32>
    %c440 = arith.constant 440 : index
    %c0_82 = arith.constant 0 : index
    %252 = vector.load %arg2[%c440, %c0_82] : memref<624x128xf32, #tpu.memory_space<vmem>>, vector<64x32xf32>
    %cst_83 = arith.constant dense<0.000000e+00> : vector<16x32xf32>
    %253 = tpu.matmul %251, %252, %cst_83 {dimension_numbers = #tpu.dot_dimension_numbers<[1], [0], [0], [1], [0, 0, 1, 1], [], []>} : vector<16x64xf32>, vector<64x32xf32>, vector<16x32xf32> -> vector<16x32xf32>
    %c504 = arith.constant 504 : index
    %c0_84 = arith.constant 0 : index
    %254 = vector.load %arg2[%c504, %c0_84] : memref<624x128xf32, #tpu.memory_space<vmem>>, vector<1x32xf32>
    %255 = vector.broadcast %254 : vector<1x32xf32> to vector<16x32xf32>
    %256 = arith.addf %253, %255 : vector<16x32xf32>
    %257 = arith.addf %256, %233 : vector<16x32xf32>
    %c512 = arith.constant 512 : index
    %c0_85 = arith.constant 0 : index
    %258 = vector.load %arg2[%c512, %c0_85] : memref<624x128xf32, #tpu.memory_space<vmem>>, vector<1x32xf32>
    %c520 = arith.constant 520 : index
    %c0_86 = arith.constant 0 : index
    %259 = vector.load %arg2[%c520, %c0_86] : memref<624x128xf32, #tpu.memory_space<vmem>>, vector<1x32xf32>
    %cst_87 = arith.constant dense<0.000000e+00> : vector<16xf32>
    %260 = vector.multi_reduction <add>, %257, %cst_87 [1] : vector<16x32xf32> to vector<16xf32>
    %261 = vector.shape_cast %260 : vector<16xf32> to vector<16x1xf32>
    %cst_88 = arith.constant 3.200000e+01 : f32
    %262 = vector.broadcast %cst_88 : f32 to vector<16x1xf32>
    %263 = arith.divf %261, %262 : vector<16x1xf32>
    %264 = vector.broadcast %263 : vector<16x1xf32> to vector<16x32xf32>
    %265 = arith.subf %257, %264 : vector<16x32xf32>
    %266 = arith.mulf %265, %265 : vector<16x32xf32>
    %cst_89 = arith.constant dense<0.000000e+00> : vector<16xf32>
    %267 = vector.multi_reduction <add>, %266, %cst_89 [1] : vector<16x32xf32> to vector<16xf32>
    %268 = vector.shape_cast %267 : vector<16xf32> to vector<16x1xf32>
    %cst_90 = arith.constant 3.200000e+01 : f32
    %269 = vector.broadcast %cst_90 : f32 to vector<16x1xf32>
    %270 = arith.divf %268, %269 : vector<16x1xf32>
    %271 = vector.broadcast %263 : vector<16x1xf32> to vector<16x32xf32>
    %272 = arith.subf %257, %271 : vector<16x32xf32>
    %cst_91 = arith.constant 9.99999996E-13 : f32
    %273 = vector.broadcast %cst_91 : f32 to vector<16x1xf32>
    %274 = arith.addf %270, %273 : vector<16x1xf32>
    %275 = math.rsqrt %274 : vector<16x1xf32>
    %276 = vector.broadcast %275 : vector<16x1xf32> to vector<16x32xf32>
    %277 = arith.mulf %272, %276 : vector<16x32xf32>
    %278 = vector.broadcast %258 : vector<1x32xf32> to vector<16x32xf32>
    %279 = arith.mulf %277, %278 : vector<16x32xf32>
    %280 = vector.broadcast %259 : vector<1x32xf32> to vector<16x32xf32>
    %281 = arith.addf %279, %280 : vector<16x32xf32>
    %c528 = arith.constant 528 : index
    %c0_92 = arith.constant 0 : index
    %282 = vector.load %arg2[%c528, %c0_92] : memref<624x128xf32, #tpu.memory_space<vmem>>, vector<32x32xf32>
    %cst_93 = arith.constant dense<0.000000e+00> : vector<16x32xf32>
    %283 = tpu.matmul %281, %282, %cst_93 {dimension_numbers = #tpu.dot_dimension_numbers<[1], [0], [0], [1], [0, 0, 1, 1], [], []>} : vector<16x32xf32>, vector<32x32xf32>, vector<16x32xf32> -> vector<16x32xf32>
    %c560 = arith.constant 560 : index
    %c0_94 = arith.constant 0 : index
    %284 = vector.load %arg2[%c560, %c0_94] : memref<624x128xf32, #tpu.memory_space<vmem>>, vector<1x32xf32>
    %285 = vector.broadcast %284 : vector<1x32xf32> to vector<16x32xf32>
    %286 = arith.addf %283, %285 : vector<16x32xf32>
    %287 = arith.mulf %286, %286 : vector<16x32xf32>
    %288 = arith.mulf %286, %287 : vector<16x32xf32>
    %cst_95 = arith.constant 4.471500e-02 : f32
    %289 = vector.broadcast %cst_95 : f32 to vector<16x32xf32>
    %290 = arith.mulf %289, %288 : vector<16x32xf32>
    %291 = arith.addf %286, %290 : vector<16x32xf32>
    %cst_96 = arith.constant 0.797884583 : f32
    %292 = vector.broadcast %cst_96 : f32 to vector<16x32xf32>
    %293 = arith.mulf %292, %291 : vector<16x32xf32>
    %294 = math.tanh %293 : vector<16x32xf32>
    %cst_97 = arith.constant 1.000000e+00 : f32
    %295 = vector.broadcast %cst_97 : f32 to vector<16x32xf32>
    %296 = arith.addf %295, %294 : vector<16x32xf32>
    %cst_98 = arith.constant 5.000000e-01 : f32
    %297 = vector.broadcast %cst_98 : f32 to vector<16x32xf32>
    %298 = arith.mulf %297, %296 : vector<16x32xf32>
    %299 = arith.mulf %286, %298 : vector<16x32xf32>
    %c568 = arith.constant 568 : index
    %c0_99 = arith.constant 0 : index
    %300 = vector.load %arg2[%c568, %c0_99] : memref<624x128xf32, #tpu.memory_space<vmem>>, vector<1x32xf32>
    %c576 = arith.constant 576 : index
    %c0_100 = arith.constant 0 : index
    %301 = vector.load %arg2[%c576, %c0_100] : memref<624x128xf32, #tpu.memory_space<vmem>>, vector<1x32xf32>
    %cst_101 = arith.constant dense<0.000000e+00> : vector<16xf32>
    %302 = vector.multi_reduction <add>, %299, %cst_101 [1] : vector<16x32xf32> to vector<16xf32>
    %303 = vector.shape_cast %302 : vector<16xf32> to vector<16x1xf32>
    %cst_102 = arith.constant 3.200000e+01 : f32
    %304 = vector.broadcast %cst_102 : f32 to vector<16x1xf32>
    %305 = arith.divf %303, %304 : vector<16x1xf32>
    %306 = vector.broadcast %305 : vector<16x1xf32> to vector<16x32xf32>
    %307 = arith.subf %299, %306 : vector<16x32xf32>
    %308 = arith.mulf %307, %307 : vector<16x32xf32>
    %cst_103 = arith.constant dense<0.000000e+00> : vector<16xf32>
    %309 = vector.multi_reduction <add>, %308, %cst_103 [1] : vector<16x32xf32> to vector<16xf32>
    %310 = vector.shape_cast %309 : vector<16xf32> to vector<16x1xf32>
    %cst_104 = arith.constant 3.200000e+01 : f32
    %311 = vector.broadcast %cst_104 : f32 to vector<16x1xf32>
    %312 = arith.divf %310, %311 : vector<16x1xf32>
    %313 = vector.broadcast %305 : vector<16x1xf32> to vector<16x32xf32>
    %314 = arith.subf %299, %313 : vector<16x32xf32>
    %cst_105 = arith.constant 9.99999996E-13 : f32
    %315 = vector.broadcast %cst_105 : f32 to vector<16x1xf32>
    %316 = arith.addf %312, %315 : vector<16x1xf32>
    %317 = math.rsqrt %316 : vector<16x1xf32>
    %318 = vector.broadcast %317 : vector<16x1xf32> to vector<16x32xf32>
    %319 = arith.mulf %314, %318 : vector<16x32xf32>
    %320 = vector.broadcast %300 : vector<1x32xf32> to vector<16x32xf32>
    %321 = arith.mulf %319, %320 : vector<16x32xf32>
    %322 = vector.broadcast %301 : vector<1x32xf32> to vector<16x32xf32>
    %323 = arith.addf %321, %322 : vector<16x32xf32>
    %c584 = arith.constant 584 : index
    %c0_106 = arith.constant 0 : index
    %324 = vector.load %arg2[%c584, %c0_106] : memref<624x128xf32, #tpu.memory_space<vmem>>, vector<32x128xf32>
    %cst_107 = arith.constant dense<0.000000e+00> : vector<16x128xf32>
    %325 = tpu.matmul %323, %324, %cst_107 {dimension_numbers = #tpu.dot_dimension_numbers<[1], [0], [0], [1], [0, 0, 1, 1], [], []>} : vector<16x32xf32>, vector<32x128xf32>, vector<16x128xf32> -> vector<16x128xf32>
    %c616 = arith.constant 616 : index
    %c0_108 = arith.constant 0 : index
    %326 = vector.load %arg2[%c616, %c0_108] : memref<624x128xf32, #tpu.memory_space<vmem>>, vector<1x128xf32>
    %327 = vector.broadcast %326 : vector<1x128xf32> to vector<16x128xf32>
    %328 = arith.addf %325, %327 : vector<16x128xf32>
    %c0_109 = arith.constant 0 : index
    %c0_110 = arith.constant 0 : index
    %329 = vector.load %arg3[%c0_109, %c0_110] : memref<16x128xf32, #tpu.memory_space<vmem>>, vector<16x128xf32>
    tpu.vector_store %arg3[%c0_109, %c0_110], %328 {strides = array<i32>} : memref<16x128xf32, #tpu.memory_space<vmem>>, vector<16x128xf32>,
    return
  }
}

</mosaic_0001>

<bundles_post_ra>
// kernel: quark_predictor_forward.1
= control target key start
LH: loop header
LB: loop body
LE: loop exit
PB: predicated region body
PF: predicated region fallthrough
CT: control target
= control target key end

     0   :  { %8 = vsyncpa [#allocation3], 0  ;;  %s3209_s12 = smov [#allocation2]   ;;  %s3490_s0 = inlined_call_operand.vmem [shape: s32[16,1], index: 0, kind: input, shape index: {}]   ;;  %s3491_s1 = inlined_call_operand.vmem [shape: f32[16,32], index: 1, kind: input, shape index: {}]   ;;  %s3492_s2 = inlined_call_operand.hbm [shape: f32[624,128], index: 2, kind: input, shape index: {}]   ;;  %s3493_s3 = inlined_call_operand.vmem [shape: f32[16,128], index: 3, kind: output, shape index: {}]  }
   0x1   :  { %s18_s13 = sshll.u32 %s3209_s12, 4  ;;  %s19_s13 = int_to_ptr.vmem [resolvable:$true] %s18_s13 }
   0x2   :  { %s3195_s14 = scalar_lea.vmem %s19_s13, 9984  ;;  %p3200_p1 = scmp.lt.s32.totalorder %s19_s13, %s19_s13 }
   0x3   :  { %p3196_p0 = scmp.ne.s32.totalorder %s19_s13, %s3195_s14  ;;  %p3201_p2 = scmp.lt.s32.totalorder %s3195_s14, %s3195_s14 }
   0x5   :  { %p3202_p3 = por %p3201_p2, %p3200_p1 }
   0x7   :  { %p3203_p4 = pnand %p3202_p3, %p3196_p0 }
   0x9   :  { %3206 = shalt.err (!%p3203_p4)
}
   0xa   :  { %s3210_s15 = smov 128   ;;  %s3211_s16 = smov 8  }
   0xb   :  { %24 = dma.hbm_to_vmem [thread:$0]  %s3492_s2, 9984, %s19_s13, [#allocation3], %s3210_s15, %s3210_s15, %s3211_s16  }
   0xc   :  { %3207 = dma.done.wait [#allocation3], 9984  }
   0xd   :  { %3208 = vsyncadd [#allocation3], 4294957312  ;;  %v3212_v0 = vmov 0   ;;  %v28_v1 = vld [vmem:[%s3490_s0] sm:$0xff]  ;;  %v51_v2 = vld [vmem:[#allocation2 + $0x38] sm:$0xff]  ;;  %v3213_v11 = vmov 0.0   ;;  %v30_v12 = vlaneseq }
   0xe   :  { %3118 = vset.pattern.permute.xlu0 %v3212_v0  ;;  %2881 = vmatprep.subr.mxu0 %v51_v2  ;;  %v50_v3 = vld [vmem:[#allocation2 + $0x30] sm:$0xff]  ;;  %v29_v4 = vld [vmem:[%s3490_s0 + $0x8] sm:$0xff]  ;;  %v48_v6 = vld [vmem:[#allocation2 + $0x20] sm:$0xff]  ;;  %vm54_vm0 = vcmask 523264   ;;  %vm138_vm3 = vcmask 261120   ;;  %vm3214_vm4 = vmmov 0  }
   0xf   :  { %33 = vperm.xlu0 %3118, %v28_v1   ;;  %2882 = vmatpush3.msra.mxu0 %v51_v2  ;;  %v49_v5 = vld [vmem:[#allocation2 + $0x28] sm:$0xff]  ;;  %v47_v7 = vld [vmem:[#allocation2 + $0x18] sm:$0xff]  ;;  %v46_v8 = vld [vmem:[#allocation2 + $0x10] sm:$0xff]  ;;  %v31_v13 = vand.u32 127, %v30_v12  ;;  %vm271_vm5 = vcmask 130048   ;;  %vm425_vm6 = vcmask 64512  }
  0x10   :  { %2883 = vmatprep.subr.mxu0 %v50_v3  ;;  %v45_v9 = vld [vmem:[#allocation2 + $0x8] sm:$0xff]  ;;  %v44_v10 = vld [vmem:[#allocation2] sm:$0xff]  ;;  %v179_v38 = vld [vmem:[#allocation2 + $0x58] sm:$0xff]  ;;  %s3216_s25 = smov 64   ;;  %s3217_s26 = smov 80  }
  0x11   :  { %2884 = vmatpush3.msra.mxu0 %v50_v3  ;;  %v52_v19 = vld [vmem:[%s3491_s1] sm:$0xff]  ;;  %v53_v20 = vld [vmem:[%s3491_s1 + $0x8] sm:$0xff]  ;;  %v178_v39 = vld [vmem:[#allocation2 + $0x50] sm:$0xff]  ;;  %s3215_s1 = smov 96   ;;  %s3218_s27 = smov 112  }
  0x12   :  { %2885 = vmatprep.subr.mxu0 %v49_v5  ;;  %v181_v36 = vld [vmem:[#allocation2 + $0x68] sm:$0xff]  ;;  %v180_v37 = vld [vmem:[#allocation2 + $0x60] sm:$0xff]  ;;  %v2707_v57 = vld [vmem:[#allocation2 + $0x70] ss:$0 sm:$0xff]  ;;  %s3219_s28 = smov 48   ;;  %s3220_s29 = smov 16  }
  0x13   :  { %36 = vperm.xlu0 %3118, %v29_v4   ;;  %2886 = vmatpush3.msra.mxu0 %v49_v5  ;;  %v2705_v47 = vld [vmem:[#allocation2 + $0x40] ss:$0 sm:$0xff]  ;;  %v2706_v49 = vld [vmem:[#allocation2 + $0x48] ss:$0 sm:$0xff] }
  0x14   :  { %2887 = vmatprep.subr.mxu0 %v48_v6  ;;  %2900 = vmatprep.subr.mxu1 %v181_v36 }
  0x15   :  { %2888 = vmatpush3.msra.mxu0 %v48_v6  ;;  %2901 = vmatpush3.msra.mxu1 %v181_v36 }
  0x16   :  { %2889 = vmatprep.subr.mxu0 %v47_v7  ;;  %2902 = vmatprep.subr.mxu1 %v180_v37 }
  0x17   :  { %2890 = vmatpush3.msra.mxu0 %v47_v7  ;;  %2903 = vmatpush3.msra.mxu1 %v180_v37 }
  0x18   :  { %2891 = vmatprep.subr.mxu0 %v46_v8  ;;  %2904 = vmatprep.subr.mxu1 %v179_v38 }
  0x19   :  { %2892 = vmatpush3.msra.mxu0 %v46_v8  ;;  %2905 = vmatpush3.msra.mxu1 %v179_v38 }
  0x1a   :  { %2893 = vmatprep.subr.mxu0 %v45_v9  ;;  %2906 = vmatprep.subr.mxu1 %v178_v39 }
  0x1b   :  { %2894 = vmatpush3.msra.mxu0 %v45_v9  ;;  %2907 = vmatpush3.msra.mxu1 %v178_v39 }
  0x1c   :  { %2895 = vmatprep.subr.mxu0 %v44_v10  ;;  %2911 = vmatprep.subr.mxu1 %v3213_v11 }
  0x1d   :  { %2896 = vmatpush3.msra.mxu0 %v44_v10 }
  0x1e   :  { %2921 = vmatprep.subr.mxu0 %v3213_v11 }
  0x8a   :  { %v34_v14 = vpop.permute.xlu0 %33 }
  0x8b   :  { %vm38_vm1 = vcmp.eq.s32.totalorder %v34_v14, %v31_v13 }
  0x8c   :  { %v2701_v15 = vsel %vm38_vm1, 1.0, %v3213_v11 }
  0x8d   :  { %2897 = vmatprep.mubr.msk.f32.mxu0 %vm54_vm0, %v2701_v15 }
  0x8e   :  { %v37_v16 = vpop.permute.xlu0 %36 }
  0x8f   :  { %vm39_vm2 = vcmp.eq.s32.totalorder %v37_v16, %v31_v13 }
  0x90   :  { %v2702_v17 = vsel %vm39_vm2, 1.0, %v3213_v11 }
  0x91   :  { %2898 = vmatmul.mubr.msk.f32.vlgmr.msra.gmra.mxu0 %vm54_vm0, %v2702_v17 }
  0x92   :  { %2923 = vmatprep.mubr.msk.f32.mxu0 %vm3214_vm4, %v3213_v11 }
 0x151   :  { %v2899_v18 = vpop.f32.mrf.mxu0 }
 0x152   :  { %v133_v23 = vadd.f32 %v2899_v18, %v53_v20 }
 0x153   :  { %v127_v21 = vpop.f32.mrf.mxu0 }
 0x154   :  { %v128_v22 = vadd.f32 %v127_v21, %v52_v19  ;;  %v142_v25 = vsel %vm138_vm3, %v133_v23, 0.0 }
 0x156   :  { %v139_v24 = vsel %vm138_vm3, %v128_v22, 0.0 }
 0x157   :  { %140 = vadd.xlane.f32.xlu1 %v139_v24 }
 0x15b   :  { %143 = vadd.xlane.f32.xlu1 %v142_v25 }
 0x1e0   :  { %v141_v26 = vpop.xlane.xlu1 %140 }
 0x1e1   :  { %v146_v27 = vmul.f32 0.03125, %v141_v26 }
 0x1e3   :  { %v148_v28 = vsub.f32 %v128_v22, %v146_v27 }
 0x1e4   :  { %v144_v29 = vpop.xlane.xlu1 %143 }
 0x1e5   :  { %v147_v30 = vmul.f32 0.03125, %v144_v29  ;;  %v150_v31 = vmul.f32 %v148_v28, %v148_v28 }
 0x1e7   :  { %v149_v32 = vsub.f32 %v133_v23, %v147_v30  ;;  %v152_v33 = vsel %vm138_vm3, %v150_v31, 0.0 }
 0x1e8   :  { %153 = vadd.xlane.f32.xlu0 %v152_v33 }
 0x1e9   :  { %v151_v34 = vmul.f32 %v149_v32, %v149_v32 }
 0x1eb   :  { %v155_v35 = vsel %vm138_vm3, %v151_v34, 0.0 }
 0x1ec   :  { %156 = vadd.xlane.f32.xlu1 %v155_v35 }
 0x271   :  { %v154_v40 = vpop.xlane.xlu0 %153 }
 0x272   :  { %v158_v41 = vmul.f32 0.03125, %v154_v40 }
 0x274   :  { %v160_v42 = vadd.f32 1e-12, %v158_v41 }
 0x275   :  { %v157_v43 = vpop.xlane.xlu1 %156 }
 0x276   :  { %3119 = vrsqrt.f32 %v160_v42  ;;  %v159_v44 = vmul.f32 0.03125, %v157_v43 }
 0x278   :  { %v161_v45 = vadd.f32 1e-12, %v159_v44 }
 0x27a   :  { %3121 = vrsqrt.f32 %v161_v45 }
 0x283   :  { %v3120_v46 = vpop.eup %3119 }
 0x284   :  { %v164_v48 = vmul.f32 %v3120_v46, %v148_v28 }
 0x286   :  { %v170_v50 = vmul.f32 %v2705_v47, %v164_v48 }
 0x287   :  { %v3122_v51 = vpop.eup %3121 }
 0x288   :  { %v165_v52 = vmul.f32 %v3122_v51, %v149_v32  ;;  %v3266_v53 = vadd.f32 %v2706_v49, %v170_v50 }
 0x28a   :  { %v171_v54 = vmul.f32 %v2705_v47, %v165_v52  ;;  %2908 = vmatprep.mubr.msk.f32.mxu1 %vm138_vm3, %v3266_v53 }
 0x28c   :  { %v3270_v55 = vadd.f32 %v2706_v49, %v171_v54 }
 0x28e   :  { %2909 = vmatmul.mubr.msk.f32.vlgmr.msra.gmra.mxu1 %vm138_vm3, %v3270_v55 }
 0x28f   :  { %2913 = vmatprep.mubr.msk.f32.mxu1 %vm3214_vm4, %v3213_v11 }
 0x34e   :  { %v2910_v56 = vpop.f32.mrf.mxu1 }
 0x34f   :  { %v3282_v60 = vadd.f32 %v2910_v56, %v2707_v57 }
 0x350   :  { %v259_v58 = vpop.f32.mrf.mxu1 }
 0x351   :  { %v3278_v59 = vadd.f32 %v2707_v57, %v259_v58 }
 0x353   :  { %269 = vrot.lane.b32.xlu1 %v3278_v59, %s3215_s1 }
 0x357   :  { %347 = vrot.lane.b32.xlu1 %v3282_v60, %s3215_s1 }
 0x3c5   :  { %v270_v61 = vpop.permute.xlu1 %269 }
 0x3c6   :  { %2912 = vmatpush3.xpose.msk.msra.mxu1 %vm271_vm5, %v270_v61 }
 0x3c7   :  { %2916 = vmatprep.subr.mxu1 %v3213_v11 }
 0x3c9   :  { %2914 = vmatmul.mubr.msk.f32.vlgmr.msra.gmra.mxu1 %vm271_vm5, %v3278_v59  ;;  %v348_v62 = vpop.permute.xlu1 %347 }
 0x3ca   :  { %2917 = vmatpush3.xpose.msk.msra.mxu1 %vm271_vm5, %v348_v62  ;;  %2918 = vmatprep.mubr.msk.f32.mxu1 %vm3214_vm4, %v3213_v11 }
 0x3cb   :  { %2926 = vmatprep.subr.mxu1 %v3213_v11 }
 0x3cd   :  { %2919 = vmatmul.mubr.msk.f32.vlgmr.msra.gmra.mxu1 %vm271_vm5, %v3282_v60 }
 0x3ce   :  { %2928 = vmatprep.mubr.msk.f32.mxu1 %vm3214_vm4, %v3213_v11 }
 0x489   :  { %v342_v63 = vpop.f32.mrf.mxu1 }
 0x48a   :  { %v423_v0 = vmul.f32 0.25, %v342_v63 }
 0x48b   :  { %v2915_v1 = vpop.f32.mrf.mxu1 }
 0x48c   :  { %v426_v2 = vsel %vm425_vm6, %v423_v0, -inf  ;;  %v942_v1 = vld [vmem:[#allocation2 + $0x78] sm:$0xff] }
 0x48d   :  { %427 = vmax.xlane.f32.xlu1 %v426_v2  ;;  %v419_v3 = vpop.f32.mrf.mxu1 }
 0x48e   :  { %v424_v4 = vmul.f32 0.25, %v419_v3 }
 0x48f   :  { %v2920_v5 = vpop.f32.mrf.mxu1 }
 0x490   :  { %v429_v6 = vsel %vm425_vm6, %v424_v4, -inf }
 0x491   :  { %430 = vmax.xlane.f32.xlu0 %v429_v6 }
 0x49e   :  { %524 = vrot.lane.b32.xlu1 %v3282_v60, %s3216_s25 }
 0x4a7   :  { %448 = vrot.lane.b32.xlu0 %v3278_v59, %s3216_s25 }
 0x4ab   :  { %602 = vrot.lane.b32.xlu0 %v3278_v59, %s3217_s26 }
 0x4af   :  { %680 = vrot.lane.b32.xlu0 %v3282_v60, %s3217_s26 }
 0x516   :  { %v428_v7 = vpop.xlane.xlu1 %427 }
 0x517   :  { %v432_v8 = vsub.f32 %v423_v0, %v428_v7  ;;  %v944_v0 = vld [vmem:[#allocation2 + $0x88] sm:$0xff] }
 0x519   :  { %v434_v9 = vmul.f32 1.442695, %v432_v8 }
 0x51a   :  { %v431_v10 = vpop.xlane.xlu0 %430  ;;  %v525_v12 = vpop.permute.xlu1 %524 }
 0x51b   :  { %3123 = vpow2.f32 %v434_v9  ;;  %v433_v13 = vsub.f32 %v424_v4, %v431_v10  ;;  %2927 = vmatpush3.msra.mxu1 %v525_v12  ;;  %v2722_v10 = vld [vmem:[#allocation2 + $0x98] ss:$0 sm:$0xff] }
 0x51c   :  { %2936 = vmatprep.subr.mxu1 %v3213_v11 }
 0x51d   :  { %v436_v14 = vmul.f32 1.442695, %v433_v13 }
 0x51e   :  { %v449_v15 = vpop.permute.xlu0 %448 }
 0x51f   :  { %3125 = vpow2.f32 %v436_v14  ;;  %2922 = vmatpush3.msra.mxu0 %v449_v15 }
 0x520   :  { %2931 = vmatprep.subr.mxu0 %v3213_v11 }
 0x522   :  { %v603_v20 = vpop.permute.xlu0 %602 }
 0x526   :  { %v681_v21 = vpop.permute.xlu0 %680 }
 0x528   :  { %v3124_v16 = vpop.eup %3123 }
 0x529   :  { %v438_v17 = vsel %vm425_vm6, %v3124_v16, 0.0 }
 0x52a   :  { %439 = vadd.xlane.f32.xlu0 %v438_v17 }
 0x52c   :  { %v3126_v18 = vpop.eup %3125 }
 0x52d   :  { %v441_v19 = vsel %vm425_vm6, %v3126_v18, 0.0 }
 0x52e   :  { %442 = vadd.xlane.f32.xlu0 %v441_v19 }
 0x544   :  { %600 = vrot.lane.b32.xlu0 %v3278_v59, %s3218_s27 }
 0x548   :  { %678 = vrot.lane.b32.xlu0 %v3282_v60, %s3218_s27 }
 0x5b3   :  { %v440_v22 = vpop.xlane.xlu0 %439 }
 0x5b4   :  { %3127 = vrcp.f32 %v440_v22 }
 0x5b7   :  { %v443_v23 = vpop.xlane.xlu0 %442 }
 0x5b8   :  { %3129 = vrcp.f32 %v443_v23 }
 0x5bb   :  { %v601_v27 = vpop.permute.xlu0 %600 }
 0x5bf   :  { %v679_v29 = vpop.permute.xlu0 %678 }
 0x5c1   :  { %v3128_v24 = vpop.eup %3127 }
 0x5c2   :  { %v445_v25 = vmul.f32 %v3128_v24, %v3124_v16 }
 0x5c4   :  { %2924 = vmatmul.mubr.msk.f32.vlgmr.msra.gmra.mxu0 %vm425_vm6, %v445_v25 }
 0x5c5   :  { %v3130_v26 = vpop.eup %3129  ;;  %2932 = vmatpush3.xpose.msk.msra.mxu0 %vm271_vm5, %v603_v20  ;;  %2933 = vmatprep.mubr.msk.f32.mxu0 %vm3214_vm4, %v3213_v11 }
 0x5c6   :  { %v447_v28 = vmul.f32 %v3130_v26, %v3126_v18  ;;  %2941 = vmatprep.subr.mxu0 %v3213_v11 }
 0x5c8   :  { %2929 = vmatmul.mubr.msk.f32.vlgmr.msra.gmra.mxu1 %vm425_vm6, %v447_v28  ;;  %2934 = vmatmul.mubr.msk.f32.vlgmr.msra.gmra.mxu0 %vm271_vm5, %v601_v27 }
 0x5c9   :  { %2937 = vmatpush3.xpose.msk.msra.mxu1 %vm271_vm5, %v681_v21  ;;  %2938 = vmatprep.mubr.msk.f32.mxu1 %vm3214_vm4, %v3213_v11 }
 0x5ca   :  { %2946 = vmatprep.subr.mxu1 %v3213_v11  ;;  %2943 = vmatprep.mubr.msk.f32.mxu0 %vm3214_vm4, %v3213_v11 }
 0x5cc   :  { %2939 = vmatmul.mubr.msk.f32.vlgmr.msra.gmra.mxu1 %vm271_vm5, %v679_v29  ;;  %v1077_v29 = vld [vmem:[#allocation2 + $0xc8] sm:$0xff] }
 0x5cd   :  { %2948 = vmatprep.mubr.msk.f32.mxu1 %vm3214_vm4, %v3213_v11 }
 0x684   :  { %v3332_v30 = vpop.f32.mrf.mxu0 }
 0x686   :  { %v2925_v31 = vpop.f32.mrf.mxu0 }
 0x687   :  { %v1074_v31 = vld [vmem:[#allocation2 + $0xb0] sm:$0xff] }
 0x688   :  { %v3334_v32 = vpop.f32.mrf.mxu1  ;;  %v674_v33 = vpop.f32.mrf.mxu0 }
 0x689   :  { %v756_v34 = vmul.f32 0.25, %v674_v33 }
 0x68a   :  { %v2930_v35 = vpop.f32.mrf.mxu1  ;;  %v2935_v36 = vpop.f32.mrf.mxu0 }
 0x68b   :  { %v758_v37 = vsel %vm425_vm6, %v756_v34, -inf }
 0x68c   :  { %759 = vmax.xlane.f32.xlu1 %v758_v37  ;;  %v752_v38 = vpop.f32.mrf.mxu1 }
 0x68d   :  { %v757_v39 = vmul.f32 0.25, %v752_v38 }
 0x68e   :  { %v2940_v40 = vpop.f32.mrf.mxu1 }
 0x68f   :  { %v761_v41 = vsel %vm425_vm6, %v757_v39, -inf }
 0x690   :  { %762 = vmax.xlane.f32.xlu0 %v761_v41 }
 0x715   :  { %v760_v42 = vpop.xlane.xlu1 %759 }
 0x716   :  { %v764_v43 = vsub.f32 %v756_v34, %v760_v42 }
 0x718   :  { %v766_v44 = vmul.f32 1.442695, %v764_v43 }
 0x719   :  { %v763_v45 = vpop.xlane.xlu0 %762 }
 0x71a   :  { %3131 = vpow2.f32 %v766_v44  ;;  %v765_v46 = vsub.f32 %v757_v39, %v763_v45  ;;  %v2725_v39 = vld [vmem:[#allocation2 + $0xa0] ss:$0 sm:$0xff]  ;;  %v2726_v44 = vld [vmem:[#allocation2 + $0xa8] ss:$0 sm:$0xff] }
 0x71c   :  { %v768_v47 = vmul.f32 1.442695, %v765_v46 }
 0x71e   :  { %3133 = vpow2.f32 %v768_v47 }
 0x727   :  { %v3132_v48 = vpop.eup %3131 }
 0x728   :  { %v770_v49 = vsel %vm425_vm6, %v3132_v48, 0.0 }
 0x729   :  { %771 = vadd.xlane.f32.xlu0 %v770_v49  ;;  %v1188_v49 = vld [vmem:[#allocation2 + $0x108] sm:$0xff] }
 0x72b   :  { %v3134_v50 = vpop.eup %3133 }
 0x72c   :  { %v773_v51 = vsel %vm425_vm6, %v3134_v50, 0.0 }
 0x72d   :  { %774 = vadd.xlane.f32.xlu1 %v773_v51  ;;  %v1186_v51 = vld [vmem:[#allocation2 + $0xf8] sm:$0xff] }
 0x73e   :  { %856 = vrot.lane.b32.xlu1 %v3282_v60, %s3219_s28  ;;  %v945_v60 = vld [vmem:[#allocation2 + $0x90] sm:$0xff] }
 0x73f   :  { %780 = vrot.lane.b32.xlu0 %v3278_v59, %s3219_s28  ;;  %v943_v59 = vld [vmem:[#allocation2 + $0x80] sm:$0xff] }
 0x7b2   :  { %v772_v52 = vpop.xlane.xlu0 %771 }
 0x7b3   :  { %3135 = vrcp.f32 %v772_v52  ;;  %v1185_v52 = vld [vmem:[#allocation2 + $0xf0] sm:$0xff] }
 0x7b6   :  { %v781_v54 = vpop.permute.xlu0 %780  ;;  %v775_v56 = vpop.xlane.xlu1 %774 }
 0x7b7   :  { %3137 = vrcp.f32 %v775_v56  ;;  %2942 = vmatpush3.msra.mxu0 %v781_v54  ;;  %v1184_v54 = vld [vmem:[#allocation2 + $0xe8] sm:$0xff]  ;;  %v1183_v56 = vld [vmem:[#allocation2 + $0xe0] sm:$0xff] }
 0x7b8   :  { %2951 = vmatprep.subr.mxu0 %v945_v60 }
 0x7ba   :  { %v857_v57 = vpop.permute.xlu1 %856 }
 0x7bb   :  { %2947 = vmatpush3.msra.mxu1 %v857_v57  ;;  %v1182_v57 = vld [vmem:[#allocation2 + $0xd8] sm:$0xff] }
 0x7bc   :  { %2962 = vmatprep.subr.mxu1 %v1077_v29 }
 0x7c0   :  { %v3136_v58 = vpop.eup %3135 }
 0x7c1   :  { %v777_v61 = vmul.f32 %v3136_v58, %v3132_v48  ;;  %v1189_v48 = vld [vmem:[#allocation2 + $0x110] sm:$0xff] }
 0x7c2   :  { %v2727_v58 = vld [vmem:[#allocation2 + $0xd0] ss:$0 sm:$0xff] }
 0x7c3   :  { %2944 = vmatmul.mubr.msk.f32.vlgmr.msra.gmra.mxu0 %vm425_vm6, %v777_v61 }
 0x7c4   :  { %v3138_v62 = vpop.eup %3137  ;;  %2952 = vmatpush3.msra.mxu0 %v945_v60 }
 0x7c5   :  { %v779_v63 = vmul.f32 %v3138_v62, %v3134_v50  ;;  %2953 = vmatprep.subr.mxu0 %v944_v0  ;;  %v1187_v50 = vld [vmem:[#allocation2 + $0x100] sm:$0xff] }
 0x7c6   :  { %2954 = vmatpush3.msra.mxu0 %v944_v0 }
 0x7c7   :  { %2949 = vmatmul.mubr.msk.f32.vlgmr.msra.gmra.mxu1 %vm425_vm6, %v779_v63  ;;  %2955 = vmatprep.subr.mxu0 %v943_v59 }
 0x7c8   :  { %2956 = vmatpush3.msra.mxu0 %v943_v59  ;;  %2963 = vmatpush3.msra.mxu1 %v1077_v29 }
 0x7c9   :  { %2957 = vmatprep.subr.mxu0 %v942_v1 }
 0x7ca   :  { %2958 = vmatpush3.msra.mxu0 %v942_v1 }
 0x7cb   :  { %2973 = vmatprep.subr.mxu0 %v1189_v48 }
 0x883   :  { %v852_v2 = vpop.f32.mrf.mxu0 }
 0x884   :  { %934 = vrot.lane.b32.xlu1 %v852_v2, %s3220_s29 }
 0x885   :  { %v2945_v3 = vpop.f32.mrf.mxu0 }
 0x887   :  { %v928_v4 = vpop.f32.mrf.mxu1 }
 0x888   :  { %936 = vrot.lane.b32.xlu0 %v928_v4, %s3220_s29 }
 0x889   :  { %v2950_v5 = vpop.f32.mrf.mxu1 }
 0x8f6   :  { %v935_v6 = vpop.permute.xlu1 %934 }
 0x8f7   :  { %v940_v7 = vsel %vm271_vm5, %v3332_v30, %v935_v6  ;;  %v1075_v30 = vld [vmem:[#allocation2 + $0xb8] sm:$0xff] }
 0x8f8   :  { %2959 = vmatprep.mubr.msk.f32.mxu0 %vm138_vm3, %v940_v7 }
 0x8fa   :  { %v937_v8 = vpop.permute.xlu0 %936 }
 0x8fb   :  { %v941_v9 = vsel %vm271_vm5, %v3334_v32, %v937_v8 }
 0x8fc   :  { %2960 = vmatmul.mubr.msk.f32.vlgmr.msra.gmra.mxu0 %vm138_vm3, %v941_v9 }
 0x8fd   :  { %2974 = vmatpush3.msra.mxu0 %v1189_v48 }
 0x8fe   :  { %2975 = vmatprep.subr.mxu0 %v1188_v49 }
 0x8ff   :  { %2976 = vmatpush3.msra.mxu0 %v1188_v49 }
 0x900   :  { %2977 = vmatprep.subr.mxu0 %v1187_v50 }
 0x901   :  { %2978 = vmatpush3.msra.mxu0 %v1187_v50 }
 0x902   :  { %2979 = vmatprep.subr.mxu0 %v1186_v51 }
 0x903   :  { %2980 = vmatpush3.msra.mxu0 %v1186_v51  ;;  %v2734_v51 = vld [vmem:[#allocation2 + $0x128] ss:$0 sm:$0xff] }
 0x904   :  { %2981 = vmatprep.subr.mxu0 %v1185_v52 }
 0x905   :  { %2982 = vmatpush3.msra.mxu0 %v1185_v52 }
 0x906   :  { %2983 = vmatprep.subr.mxu0 %v1184_v54 }
 0x907   :  { %2984 = vmatpush3.msra.mxu0 %v1184_v54 }
 0x908   :  { %2985 = vmatprep.subr.mxu0 %v1183_v56 }
 0x909   :  { %2986 = vmatpush3.msra.mxu0 %v1183_v56 }
 0x90a   :  { %2987 = vmatprep.subr.mxu0 %v1182_v57 }
 0x90b   :  { %2988 = vmatpush3.msra.mxu0 %v1182_v57  ;;  %v2735_v57 = vld [vmem:[#allocation2 + $0x150] ss:$0 sm:$0xff] }
 0x90c   :  { %3013 = vmatprep.subr.mxu0 %v3213_v11 }
 0x9bc   :  { %v2961_v12 = vpop.f32.mrf.mxu0 }
 0x9bd   :  { %v1029_v13 = vadd.f32 %v2961_v12, %v2722_v10 }
 0x9be   :  { %v1023_v14 = vpop.f32.mrf.mxu0 }
 0x9bf   :  { %v1024_v15 = vadd.f32 %v2722_v10, %v1023_v14  ;;  %v1033_v16 = vadd.f32 %v1029_v13, %v3270_v55 }
 0x9c1   :  { %v1039_v17 = vsel %vm138_vm3, %v1033_v16, 0.0  ;;  %v1032_v18 = vadd.f32 %v1024_v15, %v3266_v53  ;;  %v1076_v53 = vld [vmem:[#allocation2 + $0xc0] sm:$0xff] }
 0x9c2   :  { %1040 = vadd.xlane.f32.xlu0 %v1039_v17  ;;  %2964 = vmatprep.subr.mxu1 %v1076_v53 }
 0x9c3   :  { %v1036_v19 = vsel %vm138_vm3, %v1032_v18, 0.0  ;;  %2965 = vmatpush3.msra.mxu1 %v1076_v53 }
 0x9c4   :  { %1037 = vadd.xlane.f32.xlu1 %v1036_v19  ;;  %2966 = vmatprep.subr.mxu1 %v1075_v30 }
 0x9c5   :  { %2967 = vmatpush3.msra.mxu1 %v1075_v30 }
 0x9c6   :  { %2968 = vmatprep.subr.mxu1 %v1074_v31 }
 0x9c7   :  { %2969 = vmatpush3.msra.mxu1 %v1074_v31 }
 0xa4b   :  { %v1041_v20 = vpop.xlane.xlu0 %1040 }
 0xa4c   :  { %v1043_v21 = vmul.f32 0.03125, %v1041_v20 }
 0xa4d   :  { %v1038_v22 = vpop.xlane.xlu1 %1037 }
 0xa4e   :  { %v1045_v23 = vsub.f32 %v1033_v16, %v1043_v21  ;;  %v1042_v24 = vmul.f32 0.03125, %v1038_v22 }
 0xa50   :  { %v1044_v25 = vsub.f32 %v1032_v18, %v1042_v24  ;;  %v1047_v26 = vmul.f32 %v1045_v23, %v1045_v23  ;;  %v2730_v18 = vld [vmem:[#allocation2 + $0x118] ss:$0 sm:$0xff] }
 0xa52   :  { %v1051_v27 = vsel %vm138_vm3, %v1047_v26, 0.0  ;;  %v1046_v28 = vmul.f32 %v1044_v25, %v1044_v25 }
 0xa53   :  { %1052 = vadd.xlane.f32.xlu1 %v1051_v27 }
 0xa54   :  { %v1048_v55 = vsel %vm138_vm3, %v1046_v28, 0.0 }
 0xa55   :  { %1049 = vadd.xlane.f32.xlu0 %v1048_v55 }
 0xadc   :  { %v1053_v32 = vpop.xlane.xlu1 %1052 }
 0xadd   :  { %v1055_v33 = vmul.f32 0.03125, %v1053_v32 }
 0xade   :  { %v1050_v34 = vpop.xlane.xlu0 %1049 }
 0xadf   :  { %v1057_v35 = vadd.f32 1e-12, %v1055_v33  ;;  %v1054_v36 = vmul.f32 0.03125, %v1050_v34 }
 0xae1   :  { %3139 = vrsqrt.f32 %v1057_v35  ;;  %v1056_v37 = vadd.f32 1e-12, %v1054_v36  ;;  %v1321_v35 = vld [vmem:[#allocation2 + $0x148] sm:$0xff]  ;;  %v1320_v36 = vld [vmem:[#allocation2 + $0x140] sm:$0xff] }
 0xae2   :  { %2992 = vmatprep.subr.mxu1 %v1321_v35 }
 0xae3   :  { %3141 = vrsqrt.f32 %v1056_v37  ;;  %v1319_v37 = vld [vmem:[#allocation2 + $0x138] sm:$0xff] }
 0xaee   :  { %v3140_v38 = vpop.eup %3139 }
 0xaef   :  { %v1061_v40 = vmul.f32 %v3140_v38, %v1045_v23  ;;  %v1318_v38 = vld [vmem:[#allocation2 + $0x130] sm:$0xff] }
 0xaf0   :  { %v3142_v41 = vpop.eup %3141 }
 0xaf1   :  { %v1060_v42 = vmul.f32 %v3142_v41, %v1044_v25  ;;  %v1067_v43 = vmul.f32 %v2725_v39, %v1061_v40 }
 0xaf3   :  { %v1066_v45 = vmul.f32 %v2725_v39, %v1060_v42  ;;  %v1073_v47 = vadd.f32 %v2726_v44, %v1067_v43 }
 0xaf5   :  { %v3360_v46 = vadd.f32 %v2726_v44, %v1066_v45 }
 0xaf7   :  { %2970 = vmatprep.mubr.msk.f32.mxu1 %vm138_vm3, %v3360_v46 }
 0xaf8   :  { %2971 = vmatmul.mubr.msk.f32.vlgmr.msra.gmra.mxu1 %vm138_vm3, %v1073_v47 }
 0xaf9   :  { %2993 = vmatpush3.msra.mxu1 %v1321_v35 }
 0xafa   :  { %2994 = vmatprep.subr.mxu1 %v1320_v36 }
 0xafb   :  { %2995 = vmatpush3.msra.mxu1 %v1320_v36 }
 0xafc   :  { %2996 = vmatprep.subr.mxu1 %v1319_v37 }
 0xafd   :  { %2997 = vmatpush3.msra.mxu1 %v1319_v37 }
 0xafe   :  { %2998 = vmatprep.subr.mxu1 %v1318_v38 }
 0xaff   :  { %2999 = vmatpush3.msra.mxu1 %v1318_v38 }
 0xb00   :  { %3003 = vmatprep.subr.mxu1 %v3213_v11 }
 0xbb8   :  { %v2972_v61 = vpop.f32.mrf.mxu1 }
 0xbb9   :  { %v1161_v62 = vadd.f32 %v2972_v61, %v2727_v58 }
 0xbba   :  { %v1155_v63 = vpop.f32.mrf.mxu1 }
 0xbbb   :  { %v1165_v60 = vmul.f32 %v1161_v62, %v1161_v62  ;;  %v1156_v0 = vadd.f32 %v2727_v58, %v1155_v63 }
 0xbbd   :  { %v1167_v59 = vmul.f32 %v1165_v60, %v1161_v62  ;;  %v1164_v1 = vmul.f32 %v1156_v0, %v1156_v0 }
 0xbbf   :  { %v1169_v2 = vmul.f32 0.044715, %v1167_v59  ;;  %v1166_v3 = vmul.f32 %v1164_v1, %v1156_v0 }
 0xbc1   :  { %v1171_v4 = vadd.f32 %v1169_v2, %v1161_v62  ;;  %v1168_v5 = vmul.f32 0.044715, %v1166_v3 }
 0xbc3   :  { %v1173_v6 = vmul.f32 0.7978846, %v1171_v4  ;;  %v1170_v7 = vadd.f32 %v1168_v5, %v1156_v0 }
 0xbc5   :  { %3143 = vtanh.f32 %v1173_v6  ;;  %v1172_v8 = vmul.f32 0.7978846, %v1170_v7 }
 0xbc7   :  { %3145 = vtanh.f32 %v1172_v8 }
 0xbd2   :  { %v3144_v9 = vpop.eup %3143 }
 0xbd3   :  { %v1177_v10 = vadd.f32 1.0, %v3144_v9 }
 0xbd4   :  { %v3146_v12 = vpop.eup %3145 }
 0xbd5   :  { %v1176_v13 = vadd.f32 1.0, %v3146_v12  ;;  %v1179_v14 = vmul.f32 0.5, %v1177_v10 }
 0xbd7   :  { %v1178_v15 = vmul.f32 0.5, %v1176_v13  ;;  %v1181_v17 = vmul.f32 %v1179_v14, %v1161_v62 }
 0xbd9   :  { %v1180_v16 = vmul.f32 %v1178_v15, %v1156_v0 }
 0xbdb   :  { %2989 = vmatprep.mubr.msk.f32.mxu0 %vm54_vm0, %v1180_v16 }
 0xbdc   :  { %2990 = vmatmul.mubr.msk.f32.vlgmr.msra.gmra.mxu0 %vm54_vm0, %v1181_v17 }
 0xbdd   :  { %3015 = vmatprep.mubr.msk.f32.mxu0 %vm3214_vm4, %v3213_v11 }
 0xc9c   :  { %v2991_v19 = vpop.f32.mrf.mxu0 }
 0xc9d   :  { %v1273_v20 = vadd.f32 %v2991_v19, %v2730_v18 }
 0xc9e   :  { %v1267_v21 = vpop.f32.mrf.mxu0 }
 0xc9f   :  { %v1268_v22 = vadd.f32 %v2730_v18, %v1267_v21  ;;  %v1277_v23 = vadd.f32 %v1273_v20, %v1073_v47 }
 0xca1   :  { %v1283_v24 = vsel %vm138_vm3, %v1277_v23, 0.0  ;;  %v1276_v25 = vadd.f32 %v1268_v22, %v3360_v46  ;;  %v2733_v46 = vld [vmem:[#allocation2 + $0x120] ss:$0 sm:$0xff] }
 0xca2   :  { %1284 = vadd.xlane.f32.xlu1 %v1283_v24 }
 0xca3   :  { %v1280_v26 = vsel %vm138_vm3, %v1276_v25, 0.0 }
 0xca4   :  { %1281 = vadd.xlane.f32.xlu0 %v1280_v26 }
 0xd2b   :  { %v1285_v27 = vpop.xlane.xlu1 %1284 }
 0xd2c   :  { %v1287_v28 = vmul.f32 0.03125, %v1285_v27 }
 0xd2d   :  { %v1282_v55 = vpop.xlane.xlu0 %1281 }
 0xd2e   :  { %v1289_v29 = vsub.f32 %v1277_v23, %v1287_v28  ;;  %v1286_v53 = vmul.f32 0.03125, %v1282_v55 }
 0xd30   :  { %v1288_v30 = vsub.f32 %v1276_v25, %v1286_v53  ;;  %v1291_v31 = vmul.f32 %v1289_v29, %v1289_v29 }
 0xd32   :  { %v1295_v32 = vsel %vm138_vm3, %v1291_v31, 0.0  ;;  %v1290_v33 = vmul.f32 %v1288_v30, %v1288_v30 }
 0xd33   :  { %1296 = vadd.xlane.f32.xlu1 %v1295_v32 }
 0xd34   :  { %v1292_v34 = vsel %vm138_vm3, %v1290_v33, 0.0 }
 0xd35   :  { %1293 = vadd.xlane.f32.xlu0 %v1292_v34 }
 0xdbc   :  { %v1297_v39 = vpop.xlane.xlu1 %1296 }
 0xdbd   :  { %v1299_v40 = vmul.f32 0.03125, %v1297_v39 }
 0xdbe   :  { %v1294_v41 = vpop.xlane.xlu0 %1293 }
 0xdbf   :  { %v1301_v42 = vadd.f32 1e-12, %v1299_v40  ;;  %v1298_v43 = vmul.f32 0.03125, %v1294_v41 }
 0xdc1   :  { %3147 = vrsqrt.f32 %v1301_v42  ;;  %v1300_v44 = vadd.f32 1e-12, %v1298_v43 }
 0xdc3   :  { %3149 = vrsqrt.f32 %v1300_v44 }
 0xdce   :  { %v3148_v45 = vpop.eup %3147 }
 0xdcf   :  { %v1305_v47 = vmul.f32 %v3148_v45, %v1289_v29 }
 0xdd0   :  { %v3150_v48 = vpop.eup %3149 }
 0xdd1   :  { %v1304_v49 = vmul.f32 %v3150_v48, %v1288_v30  ;;  %v1311_v50 = vmul.f32 %v2733_v46, %v1305_v47 }
 0xdd3   :  { %v1310_v52 = vmul.f32 %v2733_v46, %v1304_v49  ;;  %v3378_v56 = vadd.f32 %v2734_v51, %v1311_v50 }
 0xdd5   :  { %v3376_v54 = vadd.f32 %v2734_v51, %v1310_v52 }
 0xdd7   :  { %3000 = vmatprep.mubr.msk.f32.mxu1 %vm138_vm3, %v3376_v54 }
 0xdd8   :  { %3001 = vmatmul.mubr.msk.f32.vlgmr.msra.gmra.mxu1 %vm138_vm3, %v3378_v56 }
 0xdd9   :  { %3005 = vmatprep.mubr.msk.f32.mxu1 %vm3214_vm4, %v3213_v11 }
 0xe98   :  { %v3002_v58 = vpop.f32.mrf.mxu1 }
 0xe99   :  { %v3386_v61 = vadd.f32 %v3002_v58, %v2735_v57 }
 0xe9a   :  { %v1399_v62 = vpop.f32.mrf.mxu1 }
 0xe9b   :  { %v3388_v63 = vadd.f32 %v2735_v57, %v1399_v62  ;;  %1486 = vrot.lane.b32.xlu1 %v3386_v61, %s3215_s1 }
 0xe9d   :  { %1409 = vrot.lane.b32.xlu0 %v3388_v63, %s3215_s1 }
 0xf0d   :  { %v1487_v0 = vpop.permute.xlu1 %1486 }
 0xf0f   :  { %v1410_v60 = vpop.permute.xlu0 %1409 }
 0xf10   :  { %3004 = vmatpush3.xpose.msk.msra.mxu1 %vm271_vm5, %v1410_v60 }
 0xf11   :  { %3008 = vmatprep.subr.mxu1 %v3213_v11 }
 0xf13   :  { %3006 = vmatmul.mubr.msk.f32.vlgmr.msra.gmra.mxu1 %vm271_vm5, %v3388_v63 }
 0xf14   :  { %3009 = vmatpush3.xpose.msk.msra.mxu1 %vm271_vm5, %v1487_v0  ;;  %3010 = vmatprep.mubr.msk.f32.mxu1 %vm3214_vm4, %v3213_v11 }
 0xf15   :  { %3018 = vmatprep.subr.mxu1 %v3213_v11 }
 0xf17   :  { %3011 = vmatmul.mubr.msk.f32.vlgmr.msra.gmra.mxu1 %vm271_vm5, %v3386_v61 }
 0xf18   :  { %3020 = vmatprep.mubr.msk.f32.mxu1 %vm3214_vm4, %v3213_v11 }
 0xfd3   :  { %v1481_v59 = vpop.f32.mrf.mxu1 }
 0xfd4   :  { %v1562_v1 = vmul.f32 0.25, %v1481_v59  ;;  %v2082_v59 = vld [vmem:[#allocation2 + $0x168] sm:$0xff] }
 0xfd5   :  { %v3007_v2 = vpop.f32.mrf.mxu1 }
 0xfd6   :  { %v1564_v3 = vsel %vm425_vm6, %v1562_v1, -inf }
 0xfd7   :  { %1565 = vmax.xlane.f32.xlu1 %v1564_v3  ;;  %v1558_v4 = vpop.f32.mrf.mxu1 }
 0xfd8   :  { %v1563_v5 = vmul.f32 0.25, %v1558_v4 }
 0xfd9   :  { %v3012_v6 = vpop.f32.mrf.mxu1 }
 0xfda   :  { %v1567_v7 = vsel %vm425_vm6, %v1563_v5, -inf }
 0xfdb   :  { %1568 = vmax.xlane.f32.xlu0 %v1567_v7 }
 0xfe8   :  { %1662 = vrot.lane.b32.xlu1 %v3386_v61, %s3216_s25 }
 0xfec   :  { %1740 = vrot.lane.b32.xlu1 %v3388_v63, %s3217_s26 }
 0xff1   :  { %1586 = vrot.lane.b32.xlu0 %v3388_v63, %s3216_s25 }
0x1060   :  { %v1566_v8 = vpop.xlane.xlu1 %1565 }
0x1061   :  { %v1570_v9 = vsub.f32 %v1562_v1, %v1566_v8  ;;  %v2080_v1 = vld [vmem:[#allocation2 + $0x158] sm:$0xff] }
0x1063   :  { %v1572_v10 = vmul.f32 1.442695, %v1570_v9 }
0x1064   :  { %v1663_v12 = vpop.permute.xlu1 %1662  ;;  %v1569_v13 = vpop.xlane.xlu0 %1568 }
0x1065   :  { %3151 = vpow2.f32 %v1572_v10  ;;  %v1571_v14 = vsub.f32 %v1563_v5, %v1569_v13  ;;  %3019 = vmatpush3.msra.mxu1 %v1663_v12  ;;  %v2750_v10 = vld [vmem:[#allocation2 + $0x178] ss:$0 sm:$0xff] }
0x1066   :  { %3028 = vmatprep.subr.mxu1 %v3213_v11 }
0x1067   :  { %v1574_v15 = vmul.f32 1.442695, %v1571_v14 }
0x1068   :  { %v1587_v16 = vpop.permute.xlu0 %1586  ;;  %v1741_v21 = vpop.permute.xlu1 %1740 }
0x1069   :  { %3153 = vpow2.f32 %v1574_v15  ;;  %3014 = vmatpush3.msra.mxu0 %v1587_v16 }
0x106a   :  { %3023 = vmatprep.subr.mxu0 %v3213_v11 }
0x1072   :  { %v3152_v17 = vpop.eup %3151 }
0x1073   :  { %v1576_v18 = vsel %vm425_vm6, %v3152_v17, 0.0 }
0x1074   :  { %1577 = vadd.xlane.f32.xlu0 %v1576_v18 }
0x1076   :  { %v3154_v19 = vpop.eup %3153 }
0x1077   :  { %v1579_v20 = vsel %vm425_vm6, %v3154_v19, 0.0 }
0x1078   :  { %1580 = vadd.xlane.f32.xlu1 %v1579_v20 }
0x1089   :  { %1738 = vrot.lane.b32.xlu1 %v3388_v63, %s3218_s27 }
0x108a   :  { %1818 = vrot.lane.b32.xlu0 %v3386_v61, %s3217_s26 }
0x108e   :  { %1816 = vrot.lane.b32.xlu0 %v3386_v61, %s3218_s27 }
0x10fd   :  { %v1578_v22 = vpop.xlane.xlu0 %1577 }
0x10fe   :  { %3155 = vrcp.f32 %v1578_v22 }
0x1101   :  { %v1581_v23 = vpop.xlane.xlu1 %1580  ;;  %v1819_v27 = vpop.permute.xlu0 %1818 }
0x1102   :  { %3157 = vrcp.f32 %v1581_v23 }
0x1105   :  { %v1739_v55 = vpop.permute.xlu1 %1738  ;;  %v1817_v29 = vpop.permute.xlu0 %1816 }
0x110b   :  { %v3156_v24 = vpop.eup %3155 }
0x110c   :  { %v1583_v25 = vmul.f32 %v3156_v24, %v3152_v17 }
0x110e   :  { %3016 = vmatmul.mubr.msk.f32.vlgmr.msra.gmra.mxu0 %vm425_vm6, %v1583_v25 }
0x110f   :  { %v3158_v26 = vpop.eup %3157  ;;  %3024 = vmatpush3.xpose.msk.msra.mxu0 %vm271_vm5, %v1741_v21  ;;  %3025 = vmatprep.mubr.msk.f32.mxu0 %vm3214_vm4, %v3213_v11 }
0x1110   :  { %v1585_v28 = vmul.f32 %v3158_v26, %v3154_v19  ;;  %3033 = vmatprep.subr.mxu0 %v3213_v11 }
0x1112   :  { %3021 = vmatmul.mubr.msk.f32.vlgmr.msra.gmra.mxu1 %vm425_vm6, %v1585_v28  ;;  %3026 = vmatmul.mubr.msk.f32.vlgmr.msra.gmra.mxu0 %vm271_vm5, %v1739_v55  ;;  %v2215_v55 = vld [vmem:[#allocation2 + $0x1a8] sm:$0xff] }
0x1113   :  { %3029 = vmatpush3.xpose.msk.msra.mxu1 %vm271_vm5, %v1819_v27  ;;  %3030 = vmatprep.mubr.msk.f32.mxu1 %vm3214_vm4, %v3213_v11 }
0x1114   :  { %3038 = vmatprep.subr.mxu1 %v3213_v11  ;;  %3035 = vmatprep.mubr.msk.f32.mxu0 %vm3214_vm4, %v3213_v11 }
0x1116   :  { %3031 = vmatmul.mubr.msk.f32.vlgmr.msra.gmra.mxu1 %vm271_vm5, %v1817_v29  ;;  %v2213_v29 = vld [vmem:[#allocation2 + $0x198] sm:$0xff] }
0x1117   :  { %3040 = vmatprep.mubr.msk.f32.mxu1 %vm3214_vm4, %v3213_v11 }
0x11ce   :  { %v3440_v53 = vpop.f32.mrf.mxu0 }
0x11d0   :  { %v3017_v30 = vpop.f32.mrf.mxu0 }
0x11d2   :  { %v3442_v31 = vpop.f32.mrf.mxu1  ;;  %v1812_v32 = vpop.f32.mrf.mxu0 }
0x11d3   :  { %v1894_v33 = vmul.f32 0.25, %v1812_v32 }
0x11d4   :  { %v3022_v34 = vpop.f32.mrf.mxu1  ;;  %v3027_v35 = vpop.f32.mrf.mxu0 }
0x11d5   :  { %v1896_v36 = vsel %vm425_vm6, %v1894_v33, -inf }
0x11d6   :  { %1897 = vmax.xlane.f32.xlu1 %v1896_v36  ;;  %v1890_v37 = vpop.f32.mrf.mxu1 }
0x11d7   :  { %v1895_v38 = vmul.f32 0.25, %v1890_v37  ;;  %v2753_v37 = vld [vmem:[#allocation2 + $0x180] ss:$0 sm:$0xff] }
0x11d8   :  { %v3032_v39 = vpop.f32.mrf.mxu1 }
0x11d9   :  { %v1899_v40 = vsel %vm425_vm6, %v1895_v38, -inf }
0x11da   :  { %1900 = vmax.xlane.f32.xlu0 %v1899_v40 }
0x125f   :  { %v1898_v41 = vpop.xlane.xlu1 %1897 }
0x1260   :  { %v1902_v11 = vsub.f32 %v1894_v33, %v1898_v41 }
0x1262   :  { %v1904_v42 = vmul.f32 1.442695, %v1902_v11  ;;  %v2754_v11 = vld [vmem:[#allocation2 + $0x188] ss:$0 sm:$0xff] }
0x1263   :  { %v1901_v43 = vpop.xlane.xlu0 %1900 }
0x1264   :  { %3159 = vpow2.f32 %v1904_v42  ;;  %v1903_v44 = vsub.f32 %v1895_v38, %v1901_v43 }
0x1266   :  { %v1906_v45 = vmul.f32 1.442695, %v1903_v44 }
0x1268   :  { %3161 = vpow2.f32 %v1906_v45  ;;  %v2327_v45 = vld [vmem:[#allocation2 + $0x1f0] sm:$0xff] }
0x1271   :  { %v3160_v46 = vpop.eup %3159 }
0x1272   :  { %v1908_v47 = vsel %vm425_vm6, %v3160_v46, 0.0 }
0x1273   :  { %1909 = vadd.xlane.f32.xlu0 %v1908_v47  ;;  %v2325_v47 = vld [vmem:[#allocation2 + $0x1e0] sm:$0xff] }
0x1275   :  { %v3162_v48 = vpop.eup %3161 }
0x1276   :  { %v1911_v49 = vsel %vm425_vm6, %v3162_v48, 0.0 }
0x1277   :  { %1912 = vadd.xlane.f32.xlu1 %v1911_v49  ;;  %v2323_v49 = vld [vmem:[#allocation2 + $0x1d0] sm:$0xff] }
0x1288   :  { %1994 = vrot.lane.b32.xlu1 %v3386_v61, %s3219_s28  ;;  %v2083_v61 = vld [vmem:[#allocation2 + $0x170] sm:$0xff] }
0x1289   :  { %1918 = vrot.lane.b32.xlu0 %v3388_v63, %s3219_s28  ;;  %v2081_v63 = vld [vmem:[#allocation2 + $0x160] sm:$0xff] }
0x12fc   :  { %v1910_v50 = vpop.xlane.xlu0 %1909 }
0x12fd   :  { %3163 = vrcp.f32 %v1910_v50  ;;  %v2322_v50 = vld [vmem:[#allocation2 + $0x1c8] sm:$0xff] }
0x1300   :  { %v1913_v51 = vpop.xlane.xlu1 %1912  ;;  %v1919_v52 = vpop.permute.xlu0 %1918 }
0x1301   :  { %3165 = vrcp.f32 %v1913_v51  ;;  %3034 = vmatpush3.msra.mxu0 %v1919_v52  ;;  %v2321_v51 = vld [vmem:[#allocation2 + $0x1c0] sm:$0xff]  ;;  %v2320_v52 = vld [vmem:[#allocation2 + $0x1b8] sm:$0xff] }
0x1302   :  { %3043 = vmatprep.subr.mxu0 %v2083_v61 }
0x1304   :  { %v1995_v57 = vpop.permute.xlu1 %1994 }
0x1305   :  { %3039 = vmatpush3.msra.mxu1 %v1995_v57  ;;  %v2755_v57 = vld [vmem:[#allocation2 + $0x1b0] ss:$0 sm:$0xff] }
0x1306   :  { %3054 = vmatprep.subr.mxu1 %v2215_v55 }
0x130a   :  { %v3164_v58 = vpop.eup %3163 }
0x130b   :  { %v1915_v62 = vmul.f32 %v3164_v58, %v3160_v46  ;;  %v2326_v46 = vld [vmem:[#allocation2 + $0x1e8] sm:$0xff] }
0x130d   :  { %3036 = vmatmul.mubr.msk.f32.vlgmr.msra.gmra.mxu0 %vm425_vm6, %v1915_v62 }
0x130e   :  { %v3166_v60 = vpop.eup %3165  ;;  %3044 = vmatpush3.msra.mxu0 %v2083_v61 }
0x130f   :  { %v1917_v0 = vmul.f32 %v3166_v60, %v3162_v48  ;;  %3045 = vmatprep.subr.mxu0 %v2082_v59  ;;  %v2324_v48 = vld [vmem:[#allocation2 + $0x1d8] sm:$0xff] }
0x1310   :  { %3046 = vmatpush3.msra.mxu0 %v2082_v59 }
0x1311   :  { %3041 = vmatmul.mubr.msk.f32.vlgmr.msra.gmra.mxu1 %vm425_vm6, %v1917_v0  ;;  %3047 = vmatprep.subr.mxu0 %v2081_v63 }
0x1312   :  { %3048 = vmatpush3.msra.mxu0 %v2081_v63  ;;  %3055 = vmatpush3.msra.mxu1 %v2215_v55 }
0x1313   :  { %3049 = vmatprep.subr.mxu0 %v2080_v1 }
0x1314   :  { %3050 = vmatpush3.msra.mxu0 %v2080_v1 }
0x1315   :  { %3065 = vmatprep.subr.mxu0 %v2327_v45 }
0x13cd   :  { %v1990_v2 = vpop.f32.mrf.mxu0 }
0x13ce   :  { %2072 = vrot.lane.b32.xlu1 %v1990_v2, %s3220_s29 }
0x13cf   :  { %v3037_v3 = vpop.f32.mrf.mxu0 }
0x13d1   :  { %v2066_v4 = vpop.f32.mrf.mxu1 }
0x13d2   :  { %2074 = vrot.lane.b32.xlu0 %v2066_v4, %s3220_s29 }
0x13d3   :  { %v3042_v5 = vpop.f32.mrf.mxu1 }
0x1440   :  { %v2073_v6 = vpop.permute.xlu1 %2072 }
0x1441   :  { %v2078_v7 = vsel %vm271_vm5, %v3440_v53, %v2073_v6  ;;  %v2212_v53 = vld [vmem:[#allocation2 + $0x190] sm:$0xff] }
0x1442   :  { %3051 = vmatprep.mubr.msk.f32.mxu0 %vm138_vm3, %v2078_v7 }
0x1444   :  { %v2075_v8 = vpop.permute.xlu0 %2074 }
0x1445   :  { %v2079_v9 = vsel %vm271_vm5, %v3442_v31, %v2075_v8 }
0x1446   :  { %3052 = vmatmul.mubr.msk.f32.vlgmr.msra.gmra.mxu0 %vm138_vm3, %v2079_v9 }
0x1447   :  { %3066 = vmatpush3.msra.mxu0 %v2327_v45 }
0x1448   :  { %3067 = vmatprep.subr.mxu0 %v2326_v46 }
0x1449   :  { %3068 = vmatpush3.msra.mxu0 %v2326_v46 }
0x144a   :  { %3069 = vmatprep.subr.mxu0 %v2325_v47 }
0x144b   :  { %3070 = vmatpush3.msra.mxu0 %v2325_v47  ;;  %v2762_v47 = vld [vmem:[#allocation2 + $0x208] ss:$0 sm:$0xff] }
0x144c   :  { %3071 = vmatprep.subr.mxu0 %v2324_v48 }
0x144d   :  { %3072 = vmatpush3.msra.mxu0 %v2324_v48 }
0x144e   :  { %3073 = vmatprep.subr.mxu0 %v2323_v49 }
0x144f   :  { %3074 = vmatpush3.msra.mxu0 %v2323_v49 }
0x1450   :  { %3075 = vmatprep.subr.mxu0 %v2322_v50 }
0x1451   :  { %3076 = vmatpush3.msra.mxu0 %v2322_v50 }
0x1452   :  { %3077 = vmatprep.subr.mxu0 %v2321_v51 }
0x1453   :  { %3078 = vmatpush3.msra.mxu0 %v2321_v51  ;;  %v2763_v51 = vld [vmem:[#allocation2 + $0x230] ss:$0 sm:$0xff] }
0x1454   :  { %3079 = vmatprep.subr.mxu0 %v2320_v52 }
0x1455   :  { %3080 = vmatpush3.msra.mxu0 %v2320_v52 }
0x1506   :  { %v3053_v12 = vpop.f32.mrf.mxu0 }
0x1507   :  { %v2167_v13 = vadd.f32 %v3053_v12, %v2750_v10 }
0x1508   :  { %v2161_v14 = vpop.f32.mrf.mxu0 }
0x1509   :  { %v2162_v15 = vadd.f32 %v2750_v10, %v2161_v14  ;;  %v2171_v16 = vadd.f32 %v2167_v13, %v3378_v56 }
0x150b   :  { %v2177_v17 = vsel %vm138_vm3, %v2171_v16, 0.0  ;;  %v2170_v18 = vadd.f32 %v2162_v15, %v3376_v54  ;;  %v2214_v54 = vld [vmem:[#allocation2 + $0x1a0] sm:$0xff] }
0x150c   :  { %2178 = vadd.xlane.f32.xlu0 %v2177_v17  ;;  %3056 = vmatprep.subr.mxu1 %v2214_v54  ;;  %v2758_v17 = vld [vmem:[#allocation2 + $0x1f8] ss:$0 sm:$0xff] }
0x150d   :  { %v2174_v19 = vsel %vm138_vm3, %v2170_v18, 0.0  ;;  %3057 = vmatpush3.msra.mxu1 %v2214_v54 }
0x150e   :  { %2175 = vadd.xlane.f32.xlu1 %v2174_v19  ;;  %3058 = vmatprep.subr.mxu1 %v2213_v29 }
0x150f   :  { %3059 = vmatpush3.msra.mxu1 %v2213_v29 }
0x1510   :  { %3060 = vmatprep.subr.mxu1 %v2212_v53 }
0x1511   :  { %3061 = vmatpush3.msra.mxu1 %v2212_v53 }
0x1595   :  { %v2179_v20 = vpop.xlane.xlu0 %2178 }
0x1596   :  { %v2181_v21 = vmul.f32 0.03125, %v2179_v20 }
0x1597   :  { %v2176_v22 = vpop.xlane.xlu1 %2175 }
0x1598   :  { %v2183_v23 = vsub.f32 %v2171_v16, %v2181_v21  ;;  %v2180_v24 = vmul.f32 0.03125, %v2176_v22 }
0x159a   :  { %v2182_v25 = vsub.f32 %v2170_v18, %v2180_v24  ;;  %v2185_v26 = vmul.f32 %v2183_v23, %v2183_v23 }
0x159c   :  { %v2189_v27 = vsel %vm138_vm3, %v2185_v26, 0.0  ;;  %v2184_v28 = vmul.f32 %v2182_v25, %v2182_v25 }
0x159d   :  { %2190 = vadd.xlane.f32.xlu1 %v2189_v27 }
0x159e   :  { %v2186_v56 = vsel %vm138_vm3, %v2184_v28, 0.0 }
0x159f   :  { %2187 = vadd.xlane.f32.xlu0 %v2186_v56 }
0x1626   :  { %v2191_v30 = vpop.xlane.xlu1 %2190 }
0x1627   :  { %v2193_v31 = vmul.f32 0.03125, %v2191_v30 }
0x1628   :  { %v2188_v32 = vpop.xlane.xlu0 %2187 }
0x1629   :  { %v2195_v33 = vadd.f32 1e-12, %v2193_v31  ;;  %v2192_v34 = vmul.f32 0.03125, %v2188_v32  ;;  %v2459_v32 = vld [vmem:[#allocation2 + $0x228] sm:$0xff] }
0x162a   :  { %3084 = vmatprep.subr.mxu1 %v2459_v32 }
0x162b   :  { %3167 = vrsqrt.f32 %v2195_v33  ;;  %v2194_v35 = vadd.f32 1e-12, %v2192_v34  ;;  %v2458_v33 = vld [vmem:[#allocation2 + $0x220] sm:$0xff]  ;;  %v2457_v34 = vld [vmem:[#allocation2 + $0x218] sm:$0xff] }
0x162d   :  { %3169 = vrsqrt.f32 %v2194_v35  ;;  %v2456_v35 = vld [vmem:[#allocation2 + $0x210] sm:$0xff] }
0x1638   :  { %v3168_v36 = vpop.eup %3167 }
0x1639   :  { %v2199_v38 = vmul.f32 %v3168_v36, %v2183_v23 }
0x163a   :  { %v3170_v39 = vpop.eup %3169 }
0x163b   :  { %v2198_v40 = vmul.f32 %v3170_v39, %v2182_v25  ;;  %v2205_v41 = vmul.f32 %v2753_v37, %v2199_v38 }
0x163d   :  { %v2204_v42 = vmul.f32 %v2753_v37, %v2198_v40  ;;  %v2211_v44 = vadd.f32 %v2754_v11, %v2205_v41 }
0x163f   :  { %v2210_v43 = vadd.f32 %v2754_v11, %v2204_v42  ;;  %v2761_v42 = vld [vmem:[#allocation2 + $0x200] ss:$0 sm:$0xff] }
0x1641   :  { %3062 = vmatprep.mubr.msk.f32.mxu1 %vm138_vm3, %v2210_v43 }
0x1642   :  { %3063 = vmatmul.mubr.msk.f32.vlgmr.msra.gmra.mxu1 %vm138_vm3, %v2211_v44 }
0x1643   :  { %3085 = vmatpush3.msra.mxu1 %v2459_v32 }
0x1644   :  { %3086 = vmatprep.subr.mxu1 %v2458_v33 }
0x1645   :  { %3087 = vmatpush3.msra.mxu1 %v2458_v33 }
0x1646   :  { %3088 = vmatprep.subr.mxu1 %v2457_v34 }
0x1647   :  { %3089 = vmatpush3.msra.mxu1 %v2457_v34  ;;  %v2766_v34 = vld [vmem:[#allocation2 + $0x238] ss:$0 sm:$0xff] }
0x1648   :  { %3090 = vmatprep.subr.mxu1 %v2456_v35 }
0x1649   :  { %3091 = vmatpush3.msra.mxu1 %v2456_v35 }
0x1702   :  { %v3064_v58 = vpop.f32.mrf.mxu1 }
0x1703   :  { %v2299_v62 = vadd.f32 %v3064_v58, %v2755_v57 }
0x1704   :  { %v2293_v60 = vpop.f32.mrf.mxu1 }
0x1705   :  { %v2303_v0 = vmul.f32 %v2299_v62, %v2299_v62  ;;  %v2294_v61 = vadd.f32 %v2755_v57, %v2293_v60 }
0x1707   :  { %v2305_v59 = vmul.f32 %v2303_v0, %v2299_v62  ;;  %v2302_v63 = vmul.f32 %v2294_v61, %v2294_v61 }
0x1709   :  { %v2307_v1 = vmul.f32 0.044715, %v2305_v59  ;;  %v2304_v2 = vmul.f32 %v2302_v63, %v2294_v61 }
0x170b   :  { %v2309_v3 = vadd.f32 %v2307_v1, %v2299_v62  ;;  %v2306_v4 = vmul.f32 0.044715, %v2304_v2 }
0x170d   :  { %v2311_v5 = vmul.f32 0.7978846, %v2309_v3  ;;  %v2308_v6 = vadd.f32 %v2306_v4, %v2294_v61 }
0x170f   :  { %3171 = vtanh.f32 %v2311_v5  ;;  %v2310_v7 = vmul.f32 0.7978846, %v2308_v6 }
0x1711   :  { %3173 = vtanh.f32 %v2310_v7 }
0x171c   :  { %v3172_v8 = vpop.eup %3171 }
0x171d   :  { %v2315_v9 = vadd.f32 1.0, %v3172_v8 }
0x171e   :  { %v3174_v10 = vpop.eup %3173 }
0x171f   :  { %v2314_v12 = vadd.f32 1.0, %v3174_v10  ;;  %v2317_v13 = vmul.f32 0.5, %v2315_v9 }
0x1721   :  { %v2316_v14 = vmul.f32 0.5, %v2314_v12  ;;  %v2319_v16 = vmul.f32 %v2317_v13, %v2299_v62 }
0x1723   :  { %v2318_v15 = vmul.f32 %v2316_v14, %v2294_v61 }
0x1725   :  { %3081 = vmatprep.mubr.msk.f32.mxu0 %vm54_vm0, %v2318_v15 }
0x1726   :  { %3082 = vmatmul.mubr.msk.f32.vlgmr.msra.gmra.mxu0 %vm54_vm0, %v2319_v16 }
0x17e6   :  { %v3083_v18 = vpop.f32.mrf.mxu0 }
0x17e7   :  { %v2411_v19 = vadd.f32 %v3083_v18, %v2758_v17 }
0x17e8   :  { %v2405_v20 = vpop.f32.mrf.mxu0 }
0x17e9   :  { %v2406_v21 = vadd.f32 %v2758_v17, %v2405_v20  ;;  %v2415_v22 = vadd.f32 %v2411_v19, %v2211_v44 }
0x17eb   :  { %v2421_v23 = vsel %vm138_vm3, %v2415_v22, 0.0  ;;  %v2414_v24 = vadd.f32 %v2406_v21, %v2210_v43 }
0x17ec   :  { %2422 = vadd.xlane.f32.xlu1 %v2421_v23 }
0x17ed   :  { %v2418_v25 = vsel %vm138_vm3, %v2414_v24, 0.0 }
0x17ee   :  { %2419 = vadd.xlane.f32.xlu0 %v2418_v25 }
0x1875   :  { %v2423_v26 = vpop.xlane.xlu1 %2422 }
0x1876   :  { %v2425_v27 = vmul.f32 0.03125, %v2423_v26 }
0x1877   :  { %v2420_v28 = vpop.xlane.xlu0 %2419 }
0x1878   :  { %v2427_v56 = vsub.f32 %v2415_v22, %v2425_v27  ;;  %v2424_v55 = vmul.f32 0.03125, %v2420_v28  ;;  %v2607_v27 = vld [vmem:[#allocation2 + $0x260] sm:$0xff]  ;;  %v2606_v28 = vld [vmem:[#allocation2 + $0x258] sm:$0xff] }
0x1879   :  { %3095 = vmatprep.subr.mxu1 %v2607_v27 }
0x187a   :  { %v2426_v54 = vsub.f32 %v2414_v24, %v2424_v55  ;;  %v2429_v29 = vmul.f32 %v2427_v56, %v2427_v56  ;;  %v2604_v55 = vld [vmem:[#allocation2 + $0x248] sm:$0xff] }
0x187c   :  { %v2433_v53 = vsel %vm138_vm3, %v2429_v29, 0.0  ;;  %v2428_v30 = vmul.f32 %v2426_v54, %v2426_v54 }
0x187d   :  { %2434 = vadd.xlane.f32.xlu1 %v2433_v53 }
0x187e   :  { %v2430_v31 = vsel %vm138_vm3, %v2428_v30, 0.0 }
0x187f   :  { %2431 = vadd.xlane.f32.xlu0 %v2430_v31 }
0x1906   :  { %v2435_v36 = vpop.xlane.xlu1 %2434 }
0x1907   :  { %v2437_v37 = vmul.f32 0.03125, %v2435_v36 }
0x1908   :  { %v2432_v38 = vpop.xlane.xlu0 %2431 }
0x1909   :  { %v2439_v39 = vadd.f32 1e-12, %v2437_v37  ;;  %v2436_v40 = vmul.f32 0.03125, %v2432_v38 }
0x190b   :  { %3175 = vrsqrt.f32 %v2439_v39  ;;  %v2438_v41 = vadd.f32 1e-12, %v2436_v40  ;;  %v2767_v39 = vld [vmem:[#allocation2 + $0x240] ss:$0 sm:$0xff] }
0x190d   :  { %3177 = vrsqrt.f32 %v2438_v41 }
0x1918   :  { %v3176_v11 = vpop.eup %3175 }
0x1919   :  { %v2443_v43 = vmul.f32 %v3176_v11, %v2427_v56  ;;  %v2605_v56 = vld [vmem:[#allocation2 + $0x250] sm:$0xff] }
0x191a   :  { %v3178_v44 = vpop.eup %3177 }
0x191b   :  { %v2442_v45 = vmul.f32 %v3178_v44, %v2426_v54  ;;  %v2449_v46 = vmul.f32 %v2761_v42, %v2443_v43 }
0x191d   :  { %v2448_v48 = vmul.f32 %v2761_v42, %v2442_v45  ;;  %v2455_v50 = vadd.f32 %v2762_v47, %v2449_v46  ;;  %v2768_v42 = vld [vmem:[#allocation2 + $0x268] ss:$0 sm:$0xff] }
0x191f   :  { %v2454_v49 = vadd.f32 %v2762_v47, %v2448_v48 }
0x1921   :  { %3092 = vmatprep.mubr.msk.f32.mxu1 %vm138_vm3, %v2454_v49 }
0x1922   :  { %3093 = vmatmul.mubr.msk.f32.vlgmr.msra.gmra.mxu1 %vm138_vm3, %v2455_v50 }
0x1923   :  { %3096 = vmatpush3.msra.mxu1 %v2607_v27 }
0x1924   :  { %3097 = vmatprep.subr.mxu1 %v2606_v28 }
0x1925   :  { %3098 = vmatpush3.msra.mxu1 %v2606_v28 }
0x1926   :  { %3099 = vmatprep.subr.mxu1 %v2605_v56 }
0x1927   :  { %3100 = vmatpush3.msra.mxu1 %v2605_v56 }
0x1928   :  { %3101 = vmatprep.subr.mxu1 %v2604_v55 }
0x1929   :  { %3102 = vmatpush3.msra.mxu1 %v2604_v55 }
0x19e2   :  { %v3094_v52 = vpop.f32.mrf.mxu1 }
0x19e3   :  { %v2543_v57 = vadd.f32 %v3094_v52, %v2763_v51 }
0x19e4   :  { %v2537_v58 = vpop.f32.mrf.mxu1 }
0x19e5   :  { %v2547_v62 = vmul.f32 %v2543_v57, %v2543_v57  ;;  %v2538_v60 = vadd.f32 %v2763_v51, %v2537_v58 }
0x19e7   :  { %v2549_v0 = vmul.f32 %v2547_v62, %v2543_v57  ;;  %v2546_v61 = vmul.f32 %v2538_v60, %v2538_v60 }
0x19e9   :  { %v2551_v59 = vmul.f32 0.044715, %v2549_v0  ;;  %v2548_v63 = vmul.f32 %v2546_v61, %v2538_v60 }
0x19eb   :  { %v2553_v1 = vadd.f32 %v2551_v59, %v2543_v57  ;;  %v2550_v2 = vmul.f32 0.044715, %v2548_v63 }
0x19ed   :  { %v2552_v3 = vadd.f32 %v2550_v2, %v2538_v60  ;;  %v2555_v4 = vmul.f32 0.7978846, %v2553_v1 }
0x19ef   :  { %3179 = vtanh.f32 %v2555_v4  ;;  %v2554_v5 = vmul.f32 0.7978846, %v2552_v3 }
0x19f1   :  { %3181 = vtanh.f32 %v2554_v5 }
0x19fc   :  { %v3180_v6 = vpop.eup %3179 }
0x19fd   :  { %v2559_v7 = vadd.f32 1.0, %v3180_v6 }
0x19fe   :  { %v3182_v8 = vpop.eup %3181 }
0x19ff   :  { %v2561_v9 = vmul.f32 0.5, %v2559_v7  ;;  %v2558_v10 = vadd.f32 1.0, %v3182_v8 }
0x1a01   :  { %v2563_v12 = vmul.f32 %v2561_v9, %v2543_v57  ;;  %v2560_v13 = vmul.f32 0.5, %v2558_v10 }
0x1a03   :  { %v2569_v14 = vsel %vm138_vm3, %v2563_v12, 0.0  ;;  %v2562_v15 = vmul.f32 %v2560_v13, %v2538_v60 }
0x1a04   :  { %2570 = vadd.xlane.f32.xlu1 %v2569_v14 }
0x1a05   :  { %v2566_v16 = vsel %vm138_vm3, %v2562_v15, 0.0 }
0x1a06   :  { %2567 = vadd.xlane.f32.xlu0 %v2566_v16 }
0x1a8d   :  { %v2571_v17 = vpop.xlane.xlu1 %2570 }
0x1a8e   :  { %v2573_v18 = vmul.f32 0.03125, %v2571_v17 }
0x1a8f   :  { %v2568_v19 = vpop.xlane.xlu0 %2567 }
0x1a90   :  { %v2575_v20 = vsub.f32 %v2563_v12, %v2573_v18  ;;  %v2572_v21 = vmul.f32 0.03125, %v2568_v19 }
0x1a92   :  { %v2574_v22 = vsub.f32 %v2562_v15, %v2572_v21  ;;  %v2577_v23 = vmul.f32 %v2575_v20, %v2575_v20 }
0x1a94   :  { %v2581_v24 = vsel %vm138_vm3, %v2577_v23, 0.0  ;;  %v2576_v25 = vmul.f32 %v2574_v22, %v2574_v22 }
0x1a95   :  { %2582 = vadd.xlane.f32.xlu1 %v2581_v24 }
0x1a96   :  { %v2578_v26 = vsel %vm138_vm3, %v2576_v25, 0.0 }
0x1a97   :  { %2579 = vadd.xlane.f32.xlu0 %v2578_v26 }
0x1b1e   :  { %v2583_v54 = vpop.xlane.xlu1 %2582 }
0x1b1f   :  { %v2585_v29 = vmul.f32 0.03125, %v2583_v54 }
0x1b20   :  { %v2580_v53 = vpop.xlane.xlu0 %2579 }
0x1b21   :  { %v2587_v30 = vadd.f32 1e-12, %v2585_v29  ;;  %v2584_v31 = vmul.f32 0.03125, %v2580_v53 }
0x1b23   :  { %3183 = vrsqrt.f32 %v2587_v30  ;;  %v2586_v32 = vadd.f32 1e-12, %v2584_v31 }
0x1b25   :  { %3185 = vrsqrt.f32 %v2586_v32 }
0x1b30   :  { %v3184_v33 = vpop.eup %3183 }
0x1b31   :  { %v2591_v35 = vmul.f32 %v3184_v33, %v2575_v20 }
0x1b32   :  { %v3186_v36 = vpop.eup %3185 }
0x1b33   :  { %v2590_v37 = vmul.f32 %v3186_v36, %v2574_v22  ;;  %v2597_v38 = vmul.f32 %v2766_v34, %v2591_v35 }
0x1b35   :  { %v2596_v40 = vmul.f32 %v2766_v34, %v2590_v37  ;;  %v2603_v11 = vadd.f32 %v2767_v39, %v2597_v38 }
0x1b37   :  { %v2602_v41 = vadd.f32 %v2767_v39, %v2596_v40 }
0x1b39   :  { %3103 = vmatprep.mubr.msk.f32.mxu1 %vm138_vm3, %v2602_v41 }
0x1b3a   :  { %3104 = vmatmul.mubr.msk.f32.vlgmr.msra.gmra.mxu1 %vm138_vm3, %v2603_v11 }
0x1bfa   :  { %v3105_v43 = vpop.f32.mrf.mxu1 }
0x1bfb   :  { %v2691_v44 = vadd.f32 %v3105_v43, %v2768_v42 }
0x1bfc   :  { %v2685_v45 = vpop.f32.mrf.mxu1 }
0x1bfd   :  { %2695 = vst [vmem:[%s3493_s3 + $0x8] sm:$0xff] %v2691_v44  ;;  %v2686_v46 = vadd.f32 %v2768_v42, %v2685_v45 }
0x1bff   :  { %2694 = vst [vmem:[%s3493_s3] sm:$0xff] %v2686_v46 }
0x1c00   :  { %2700 = vsyncpa [#allocation3], 1 }

</bundles_post_ra>
